<compile_context>
chip_gen: v7x
topology: tpu7x:2x2x1
jax: 0.10.0
libtpu: 0.0.40
codegen_flags: <defaults>
</compile_context>

<pallas_src>
import functools

import jax
import jax.numpy as jnp
import numpy as np
from jax import lax
from jax.experimental import pallas as pl
from jax.experimental.pallas import tpu as pltpu


# ----------------------------------------------------------------------------
# Relative position bias (static gather, depends only on geometry) — done once
# in plain JAX and fed to the kernel as a dense (heads, N, N) tensor.
# ----------------------------------------------------------------------------
def make_relative_bias(table, ih, iw):
    """table ((2ih-1)(2iw-1), heads) -> dense bias (heads, N, N), N = ih*iw."""
    heads = table.shape[1]
    coords = jnp.stack(
        jnp.meshgrid(jnp.arange(ih), jnp.arange(iw), indexing="ij")
    )  # (2, ih, iw)
    coords = coords.reshape(2, -1)  # (2, N)
    rel = coords[:, :, None] - coords[:, None, :]  # (2, N, N)
    rel = rel.at[0].add(ih - 1)
    rel = rel.at[1].add(iw - 1)
    rel = rel.at[0].multiply(2 * iw - 1)
    rel_index = rel.transpose(1, 2, 0).sum(-1).reshape(-1)  # (N*N,)
    bias = table[rel_index]  # (N*N, heads)
    n = ih * iw
    bias = bias.reshape(n, n, heads).transpose(2, 0, 1)  # (heads, N, N)
    return bias.astype(jnp.float32)


# ----------------------------------------------------------------------------
# Pallas kernel: attention for `batch_block` batch elements per grid step
# ----------------------------------------------------------------------------
def attention_kernel(x_ref, wqkv_ref, bias_ref, wout_ref, bout_ref, o_ref, *,
                     heads, dim_head, batch_block, seq_len):
    BB, N, d = batch_block, seq_len, dim_head
    G = heads * BB
    inner = heads * d
    oup_pad = o_ref.shape[-1]
    f32 = jnp.float32
    bf16 = jnp.bfloat16

    # --- hoisted ref reads (once per grid step) ------------------------------
    x = x_ref[...]            # (BB*N, inp)          bf16
    wqkv = wqkv_ref[...]      # (inp, 3*inner)       bf16 (scale folded into Q)
    bias = bias_ref[...]      # (heads, N, N)        f32
    wout = wout_ref[...]      # (heads, d, oup_pad)  bf16
    bout = bout_ref[...]      # (1, oup_pad)         f32

    # --- fused QKV projection: one lane-dense MXU matmul (384-wide output) ---
    qkv = jnp.dot(x, wqkv, preferred_element_type=f32)     # (BB*N, 3*inner) f32

    # --- head split: 128-aligned q/k/v slices, then per-head lane slices ------
    # stacked along a NEW LEADING axis (no minor-dim transposes).
    def split_heads(t2d):      # (BB*N, inner) -> (heads*BB, N, d), g = h*BB + b
        parts = [t2d[:, h * d:(h + 1) * d] for h in range(heads)]
        th = jnp.stack(parts, axis=0)                       # (heads, BB*N, d)
        return th.reshape(G, N, d)                          # leading split only

    q = split_heads(qkv[:, 0 * inner:1 * inner]).astype(bf16)
    k = split_heads(qkv[:, 1 * inner:2 * inner]).astype(bf16)
    v = split_heads(qkv[:, 2 * inner:3 * inner]).astype(bf16)

    bmm_std = (((2,), (1,)), ((0,), (0,)))   # (G,M,K) x (G,K,P) -> (G,M,P)
    bmm_tr = (((2,), (2,)), ((0,), (0,)))    # (G,M,K) x (G,P,K) -> (G,M,P)

    # --- scores + relative position bias (f32 accum; no k.T materialised) ----
    dots = lax.dot_general(q, k, bmm_tr,
                           preferred_element_type=f32)      # (G, N, N) f32
    dots = dots.reshape(heads, BB, N, N) + bias[:, None]    # bias broadcast (VPU)

    # --- numerically-stable softmax, all in f32 -------------------------------
    m = jnp.max(dots, axis=-1, keepdims=True)
    p = jnp.exp(dots - m)
    denom = jnp.sum(p, axis=-1, keepdims=True)
    r = pl.reciprocal(denom, approx=True)                   # EUP slot
    r = r * (2.0 - denom * r)                               # one Newton step

    # --- PV matmul first, normalise AFTER on the small (G, N, d) tensor ------
    o = lax.dot_general(p.reshape(G, N, N).astype(bf16), v, bmm_std,
                        preferred_element_type=f32)         # (G, N, d) f32
    o = o * r.reshape(G, N, 1)

    # --- output projection (per-head, un-replicated wout) + sum over heads ----
    wout_g = jnp.broadcast_to(wout[:, None], (heads, BB, d, oup_pad))
    wout_g = wout_g.reshape(G, d, oup_pad)
    proj = lax.dot_general(o.astype(bf16), wout_g, bmm_std,
                           preferred_element_type=f32)      # (G, N, oup_pad)
    res = proj.reshape(heads, BB, N, oup_pad).sum(axis=0)   # (BB, N, oup_pad)
    res = res.reshape(BB * N, oup_pad) + bout
    o_ref[...] = res.astype(o_ref.dtype)                    # full-128-lane store


# ----------------------------------------------------------------------------
# Wrapper: one-time layout / parameter prep (pure JAX) + pallas_call
# ----------------------------------------------------------------------------
def coatnet_attention(x, wqkv, bias_dense, wout, bout, *, heads, dim_head,
                      batch_block=1):
    B, N, inp = x.shape
    inner = heads * dim_head
    oup = wout.shape[1]
    scale = dim_head ** (-0.5)

    assert B % batch_block == 0
    BB = batch_block
    grid_b = B // BB
    G = heads * BB

    # Lane-dense output: pad oup to the next multiple of 128 in the weights so
    # every kernel store is an unmasked 128-lane vst (no-op for oup % 128 == 0).
    oup_pad = ((oup + 127) // 128) * 128

    # --- parameter prep (outside the kernel, runs once under jit) ------------
    wq, wk, wv = jnp.split(wqkv, 3, axis=1)                 # (inp, inner) each
    wqkv_fused = jnp.concatenate([wq * scale, wk, wv], axis=1)  # scale folded
    wqkv_fused = wqkv_fused.astype(jnp.bfloat16)            # (inp, 3*inner)

    wout_h = wout.reshape(heads, dim_head, oup)
    wout_h = jnp.pad(wout_h, ((0, 0), (0, 0), (0, oup_pad - oup)))
    wout_h = wout_h.astype(jnp.bfloat16)                    # (heads, d, oup_pad)

    bout_p = jnp.pad(bout.reshape(1, oup), ((0, 0), (0, oup_pad - oup)))
    bout_p = bout_p.astype(jnp.float32)                     # (1, oup_pad)

    bias_f = bias_dense.astype(jnp.float32)                 # (heads, N, N)
    x2d = x.reshape(B * N, inp).astype(jnp.bfloat16)        # lane-dense slab

    kernel = functools.partial(attention_kernel, heads=heads, dim_head=dim_head,
                               batch_block=BB, seq_len=N)

    # --- VMEM budget (resident blocks x2 buffers + in-kernel intermediates) --
    block_bytes = (BB * N * inp * 2 + inp * 3 * inner * 2 + heads * N * N * 4
                   + heads * dim_head * oup_pad * 2 + oup_pad * 4
                   + BB * N * oup_pad * 4)
    interm_bytes = (BB * N * 3 * inner * 4 + 3 * G * N * dim_head * 4
                    + 2 * G * N * N * 4 + G * N * dim_head * 4
                    + 2 * G * N * oup_pad * 4)
    vmem_limit = int(min(max(2 * block_bytes + interm_bytes + (8 << 20),
                             32 << 20), 60 << 20))

    flops = grid_b * (2 * BB * N * inp * 3 * inner            # fused QKV
                      + 4 * G * N * N * dim_head              # scores + PV
                      + 2 * G * N * dim_head * oup_pad)       # out projection
    cost = pl.CostEstimate(
        flops=int(flops),
        transcendentals=int(grid_b * G * N * N),
        bytes_accessed=int(x2d.size * 2 + wqkv_fused.size * 2 + bias_f.size * 4
                           + wout_h.size * 2 + bout_p.size * 4
                           + B * N * oup_pad * 4))

    out2d = pl.pallas_call(
        kernel,
        out_shape=jax.ShapeDtypeStruct((B * N, oup_pad), x.dtype),
        grid_spec=pltpu.PrefetchScalarGridSpec(
            num_scalar_prefetch=0,
            grid=(grid_b,),
            in_specs=[
                # activation slab: streamed per grid step
                pl.BlockSpec((BB * N, inp), lambda b: (b, 0)),
                # parameters: grid-invariant index maps -> DMA'd once, resident
                pl.BlockSpec((inp, 3 * inner), lambda b: (0, 0)),
                pl.BlockSpec((heads, N, N), lambda b: (0, 0, 0)),
                pl.BlockSpec((heads, dim_head, oup_pad), lambda b: (0, 0, 0)),
                pl.BlockSpec((1, oup_pad), lambda b: (0, 0)),
            ],
            out_specs=pl.BlockSpec((BB * N, oup_pad), lambda b: (b, 0)),
        ),
        compiler_params=pltpu.CompilerParams(
            dimension_semantics=("parallel",),
            vmem_limit_bytes=vmem_limit),
        cost_estimate=cost,
    )(x2d, wqkv_fused, bias_f, wout_h, bout_p)

    return out2d[:, :oup].reshape(B, N, oup)


# ----------------------------------------------------------------------------
# Pure-JAX reference (mirrors the PyTorch forward).  With
# bf16_matmul_operands=True it applies the same bf16 operand casts as the
# kernel (f32 accumulation everywhere) so the comparison isolates kernel
# structure/layout correctness from bf16 quantisation.
# ----------------------------------------------------------------------------
def reference_attention(x, wqkv, bias_dense, wout, bout, *, heads, dim_head,
                        bf16_matmul_operands=False):
    B, N, _ = x.shape
    inner = heads * dim_head
    scale = dim_head ** (-0.5)
    f32 = jnp.float32

    def cast(t):
        return t.astype(jnp.bfloat16) if bf16_matmul_operands else t

    wq, wk, wv = jnp.split(wqkv, 3, axis=1)
    wq = wq * scale                         # same scale folding as the kernel

    def project(w):
        y = jnp.dot(cast(x.reshape(B * N, -1)), cast(w),
                    preferred_element_type=f32)             # (B*N, inner)
        return y.reshape(B, N, heads, dim_head).transpose(0, 2, 1, 3)

    q, k, v = project(wq), project(wk), project(wv)          # (B, H, N, d)
    dots = jnp.einsum("bhnd,bhmd->bhnm", cast(q), cast(k),
                      preferred_element_type=f32)            # (B, H, N, N)
    dots = dots + bias_dense[None].astype(f32)
    m = jnp.max(dots, axis=-1, keepdims=True)
    p = jnp.exp(dots - m)
    denom = jnp.sum(p, axis=-1, keepdims=True)
    o = jnp.einsum("bhnm,bhmd->bhnd", cast(p), cast(v),
                   preferred_element_type=f32) / denom       # (B, H, N, d)
    o = o.transpose(0, 2, 1, 3).reshape(B, N, inner)
    out = jnp.dot(cast(o.reshape(B * N, inner)), cast(wout),
                  preferred_element_type=f32).reshape(B, N, -1)
    return out + bout[0].astype(f32)


# ----------------------------------------------------------------------------
# Main
# ----------------------------------------------------------------------------
if __name__ == "__main__":
    # Small shapes consistent with the module:
    #   image_size=8 -> N = 64, inp=32, oup=32, heads=4, dim_head=32
    B = 2
    ih = iw = 8
    N = ih * iw
    inp = 32
    oup = 32
    heads = 4
    dim_head = 32
    inner = heads * dim_head

    key = jax.random.PRNGKey(0)
    k_x, k_qkv, k_tab, k_out, k_bout = jax.random.split(key, 5)

    x = jax.random.normal(k_x, (B, N, inp), dtype=jnp.float32)
    # (relative_bias_table is zeros at PyTorch init; small randoms here so the
    #  bias-add path is actually exercised.)
    wqkv = jax.random.normal(k_qkv, (inp, 3 * inner), jnp.float32) * (inp ** -0.5)
    rel_bias_table = jax.random.normal(
        k_tab, ((2 * ih - 1) * (2 * iw - 1), heads), jnp.float32) * 0.02
    wout = jax.random.normal(k_out, (inner, oup), jnp.float32) * (inner ** -0.5)
    bout = jax.random.normal(k_bout, (1, oup), jnp.float32) * 0.01

    bias_dense = make_relative_bias(rel_bias_table, ih, iw)   # (heads, N, N)

    out = coatnet_attention(x, wqkv, bias_dense, wout, bout,
                            heads=heads, dim_head=dim_head, batch_block=1)
    out = jax.block_until_ready(out)

    # 1) Tight check vs a reference with identical bf16 operand casts
    #    (validates kernel structure / layout / softmax / bias handling).
    ref_bf16 = reference_attention(x, wqkv, bias_dense, wout, bout,
                                   heads=heads, dim_head=dim_head,
                                   bf16_matmul_operands=True)
    ref_bf16 = jax.block_until_ready(ref_bf16)
    np.testing.assert_allclose(np.asarray(out), np.asarray(ref_bf16),
                               rtol=1e-3, atol=1e-3)

    # 2) Loose check vs the pure-f32 PyTorch-equivalent reference (tolerance
    #    covers the intentional bf16 MXU operand quantisation).
    ref_f32 = reference_attention(x, wqkv, bias_dense, wout, bout,
                                  heads=heads, dim_head=dim_head,
                                  bf16_matmul_operands=False)
    ref_f32 = jax.block_until_ready(ref_f32)
    np.testing.assert_allclose(np.asarray(out), np.asarray(ref_f32),
                               rtol=5e-2, atol=5e-2)

    print("KERNEL_OK")
</pallas_src>

<mosaic_0001>
module attributes {stable_mosaic.version = 11 : i64} {
  func.func @attention_kernel(%arg0: i32, %arg1: memref<64x32xbf16, #tpu.memory_space<vmem>>, %arg2: memref<32x384xbf16, #tpu.memory_space<vmem>>, %arg3: memref<4x64x64xf32, #tpu.memory_space<vmem>>, %arg4: memref<4x32x128xbf16, #tpu.memory_space<vmem>>, %arg5: memref<1x128xf32, #tpu.memory_space<vmem>>, %arg6: memref<64x128xf32, #tpu.memory_space<vmem>>) attributes {dimension_semantics = [#tpu.dimension_semantics<parallel>], iteration_bounds = array<i64: 2>, scalar_prefetch = 0 : i64, scratch_operands = 0 : i64, tpu.core_type = #tpu.core_type<tc>, window_params = [{transform_indices = @transform_0, window_bounds = array<i64: 64, 32>}, {pipeline_mode = #tpu.pipeline_mode<synchronous>, transform_indices = @transform_1, window_bounds = array<i64: 32, 384>}, {pipeline_mode = #tpu.pipeline_mode<synchronous>, transform_indices = @transform_2, window_bounds = array<i64: 4, 64, 64>}, {pipeline_mode = #tpu.pipeline_mode<synchronous>, transform_indices = @transform_3, window_bounds = array<i64: 4, 32, 128>}, {pipeline_mode = #tpu.pipeline_mode<synchronous>, transform_indices = @transform_4, window_bounds = array<i64: 1, 128>}, {transform_indices = @transform_5, window_bounds = array<i64: 64, 128>}]} {
    %c0 = arith.constant 0 : index
    %c0_0 = arith.constant 0 : index
    %0 = vector.load %arg1[%c0, %c0_0] : memref<64x32xbf16, #tpu.memory_space<vmem>>, vector<64x32xbf16>
    %c0_1 = arith.constant 0 : index
    %c0_2 = arith.constant 0 : index
    %1 = vector.load %arg2[%c0_1, %c0_2] : memref<32x384xbf16, #tpu.memory_space<vmem>>, vector<32x384xbf16>
    %c0_3 = arith.constant 0 : index
    %c0_4 = arith.constant 0 : index
    %c0_5 = arith.constant 0 : index
    %2 = vector.load %arg3[%c0_3, %c0_4, %c0_5] : memref<4x64x64xf32, #tpu.memory_space<vmem>>, vector<4x64x64xf32>
    %c0_6 = arith.constant 0 : index
    %c0_7 = arith.constant 0 : index
    %c0_8 = arith.constant 0 : index
    %3 = vector.load %arg4[%c0_6, %c0_7, %c0_8] : memref<4x32x128xbf16, #tpu.memory_space<vmem>>, vector<4x32x128xbf16>
    %c0_9 = arith.constant 0 : index
    %c0_10 = arith.constant 0 : index
    %4 = vector.load %arg5[%c0_9, %c0_10] : memref<1x128xf32, #tpu.memory_space<vmem>>, vector<1x128xf32>
    %cst = arith.constant dense<0.000000e+00> : vector<64x384xf32>
    %5 = tpu.matmul %0, %1, %cst {dimension_numbers = #tpu.dot_dimension_numbers<[1], [0], [0], [1], [0, 0, 1, 1], [], []>} : vector<64x32xbf16>, vector<32x384xbf16>, vector<64x384xf32> -> vector<64x384xf32>
    %6 = vector.extract_strided_slice %5 {offsets = [0, 0], sizes = [64, 128], strides = [1, 1]} : vector<64x384xf32> to vector<64x128xf32>
    %7 = vector.extract_strided_slice %6 {offsets = [0, 0], sizes = [64, 32], strides = [1, 1]} : vector<64x128xf32> to vector<64x32xf32>
    %8 = vector.extract_strided_slice %6 {offsets = [0, 32], sizes = [64, 32], strides = [1, 1]} : vector<64x128xf32> to vector<64x32xf32>
    %9 = vector.extract_strided_slice %6 {offsets = [0, 64], sizes = [64, 32], strides = [1, 1]} : vector<64x128xf32> to vector<64x32xf32>
    %10 = vector.extract_strided_slice %6 {offsets = [0, 96], sizes = [64, 32], strides = [1, 1]} : vector<64x128xf32> to vector<64x32xf32>
    %11 = vector.shape_cast %7 : vector<64x32xf32> to vector<1x64x32xf32>
    %12 = vector.shape_cast %8 : vector<64x32xf32> to vector<1x64x32xf32>
    %13 = vector.shape_cast %9 : vector<64x32xf32> to vector<1x64x32xf32>
    %14 = vector.shape_cast %10 : vector<64x32xf32> to vector<1x64x32xf32>
    %15 = tpu.concatenate %11, %12, %13, %14 in 0 : vector<1x64x32xf32>, vector<1x64x32xf32>, vector<1x64x32xf32>, vector<1x64x32xf32> -> vector<4x64x32xf32>
    %16 = arith.truncf %15 : vector<4x64x32xf32> to vector<4x64x32xbf16>
    %17 = vector.extract_strided_slice %5 {offsets = [0, 128], sizes = [64, 128], strides = [1, 1]} : vector<64x384xf32> to vector<64x128xf32>
    %18 = vector.extract_strided_slice %17 {offsets = [0, 0], sizes = [64, 32], strides = [1, 1]} : vector<64x128xf32> to vector<64x32xf32>
    %19 = vector.extract_strided_slice %17 {offsets = [0, 32], sizes = [64, 32], strides = [1, 1]} : vector<64x128xf32> to vector<64x32xf32>
    %20 = vector.extract_strided_slice %17 {offsets = [0, 64], sizes = [64, 32], strides = [1, 1]} : vector<64x128xf32> to vector<64x32xf32>
    %21 = vector.extract_strided_slice %17 {offsets = [0, 96], sizes = [64, 32], strides = [1, 1]} : vector<64x128xf32> to vector<64x32xf32>
    %22 = vector.shape_cast %18 : vector<64x32xf32> to vector<1x64x32xf32>
    %23 = vector.shape_cast %19 : vector<64x32xf32> to vector<1x64x32xf32>
    %24 = vector.shape_cast %20 : vector<64x32xf32> to vector<1x64x32xf32>
    %25 = vector.shape_cast %21 : vector<64x32xf32> to vector<1x64x32xf32>
    %26 = tpu.concatenate %22, %23, %24, %25 in 0 : vector<1x64x32xf32>, vector<1x64x32xf32>, vector<1x64x32xf32>, vector<1x64x32xf32> -> vector<4x64x32xf32>
    %27 = arith.truncf %26 : vector<4x64x32xf32> to vector<4x64x32xbf16>
    %28 = vector.extract_strided_slice %5 {offsets = [0, 256], sizes = [64, 128], strides = [1, 1]} : vector<64x384xf32> to vector<64x128xf32>
    %29 = vector.extract_strided_slice %28 {offsets = [0, 0], sizes = [64, 32], strides = [1, 1]} : vector<64x128xf32> to vector<64x32xf32>
    %30 = vector.extract_strided_slice %28 {offsets = [0, 32], sizes = [64, 32], strides = [1, 1]} : vector<64x128xf32> to vector<64x32xf32>
    %31 = vector.extract_strided_slice %28 {offsets = [0, 64], sizes = [64, 32], strides = [1, 1]} : vector<64x128xf32> to vector<64x32xf32>
    %32 = vector.extract_strided_slice %28 {offsets = [0, 96], sizes = [64, 32], strides = [1, 1]} : vector<64x128xf32> to vector<64x32xf32>
    %33 = vector.shape_cast %29 : vector<64x32xf32> to vector<1x64x32xf32>
    %34 = vector.shape_cast %30 : vector<64x32xf32> to vector<1x64x32xf32>
    %35 = vector.shape_cast %31 : vector<64x32xf32> to vector<1x64x32xf32>
    %36 = vector.shape_cast %32 : vector<64x32xf32> to vector<1x64x32xf32>
    %37 = tpu.concatenate %33, %34, %35, %36 in 0 : vector<1x64x32xf32>, vector<1x64x32xf32>, vector<1x64x32xf32>, vector<1x64x32xf32> -> vector<4x64x32xf32>
    %38 = arith.truncf %37 : vector<4x64x32xf32> to vector<4x64x32xbf16>
    %cst_11 = arith.constant dense<0.000000e+00> : vector<4x64x64xf32>
    %39 = tpu.matmul %16, %27, %cst_11 {dimension_numbers = #tpu.dot_dimension_numbers<[2], [2], [1], [1], [0, 0, 0, 1, 1, 1], [0], [0]>} : vector<4x64x32xbf16>, vector<4x64x32xbf16>, vector<4x64x64xf32> -> vector<4x64x64xf32>
    %40 = vector.shape_cast %39 : vector<4x64x64xf32> to vector<4x1x64x64xf32>
    %41 = vector.shape_cast %2 : vector<4x64x64xf32> to vector<4x1x64x64xf32>
    %42 = arith.addf %40, %41 : vector<4x1x64x64xf32>
    %cst_12 = arith.constant dense<0xFF800000> : vector<4x1x64xf32>
    %43 = vector.multi_reduction <maximumf>, %42, %cst_12 [3] : vector<4x1x64x64xf32> to vector<4x1x64xf32>
    %44 = vector.shape_cast %43 : vector<4x1x64xf32> to vector<4x1x64x1xf32>
    %45 = vector.broadcast %44 : vector<4x1x64x1xf32> to vector<4x1x64x64xf32>
    %46 = arith.subf %42, %45 : vector<4x1x64x64xf32>
    %47 = math.exp %46 : vector<4x1x64x64xf32>
    %cst_13 = arith.constant dense<0.000000e+00> : vector<4x1x64xf32>
    %48 = vector.multi_reduction <add>, %47, %cst_13 [3] : vector<4x1x64x64xf32> to vector<4x1x64xf32>
    %49 = vector.shape_cast %48 : vector<4x1x64xf32> to vector<4x1x64x1xf32>
    %50 = tpu.reciprocal %49 {approx = true} : vector<4x1x64x1xf32> -> vector<4x1x64x1xf32>
    %51 = arith.mulf %49, %50 : vector<4x1x64x1xf32>
    %cst_14 = arith.constant 2.000000e+00 : f32
    %52 = vector.broadcast %cst_14 : f32 to vector<4x1x64x1xf32>
    %53 = arith.subf %52, %51 : vector<4x1x64x1xf32>
    %54 = arith.mulf %50, %53 : vector<4x1x64x1xf32>
    %55 = vector.shape_cast %47 : vector<4x1x64x64xf32> to vector<4x64x64xf32>
    %56 = arith.truncf %55 : vector<4x64x64xf32> to vector<4x64x64xbf16>
    %cst_15 = arith.constant dense<0.000000e+00> : vector<4x64x32xf32>
    %57 = tpu.matmul %56, %38, %cst_15 {dimension_numbers = #tpu.dot_dimension_numbers<[2], [1], [1], [2], [0, 0, 0, 1, 1, 2], [0], [0]>} : vector<4x64x64xbf16>, vector<4x64x32xbf16>, vector<4x64x32xf32> -> vector<4x64x32xf32>
    %58 = vector.shape_cast %54 : vector<4x1x64x1xf32> to vector<4x64x1xf32>
    %59 = vector.broadcast %58 : vector<4x64x1xf32> to vector<4x64x32xf32>
    %60 = arith.mulf %57, %59 : vector<4x64x32xf32>
    %61 = vector.shape_cast %3 : vector<4x32x128xbf16> to vector<4x1x32x128xbf16>
    %62 = vector.shape_cast %61 : vector<4x1x32x128xbf16> to vector<4x32x128xbf16>
    %63 = arith.truncf %60 : vector<4x64x32xf32> to vector<4x64x32xbf16>
    %cst_16 = arith.constant dense<0.000000e+00> : vector<4x64x128xf32>
    %64 = tpu.matmul %63, %62, %cst_16 {dimension_numbers = #tpu.dot_dimension_numbers<[2], [1], [1], [2], [0, 0, 0, 1, 1, 2], [0], [0]>} : vector<4x64x32xbf16>, vector<4x32x128xbf16>, vector<4x64x128xf32> -> vector<4x64x128xf32>
    %65 = vector.shape_cast %64 : vector<4x64x128xf32> to vector<4x1x64x128xf32>
    %cst_17 = arith.constant dense<0.000000e+00> : vector<1x64x128xf32>
    %66 = vector.multi_reduction <add>, %65, %cst_17 [0] : vector<4x1x64x128xf32> to vector<1x64x128xf32>
    %67 = vector.shape_cast %66 : vector<1x64x128xf32> to vector<64x128xf32>
    %68 = vector.broadcast %4 : vector<1x128xf32> to vector<64x128xf32>
    %69 = arith.addf %67, %68 : vector<64x128xf32>
    %c0_18 = arith.constant 0 : index
    %c0_19 = arith.constant 0 : index
    %70 = vector.load %arg6[%c0_18, %c0_19] : memref<64x128xf32, #tpu.memory_space<vmem>>, vector<64x128xf32>
    tpu.vector_store %arg6[%c0_18, %c0_19], %69 {strides = array<i32>} : memref<64x128xf32, #tpu.memory_space<vmem>>, vector<64x128xf32>,
    return
  }
  func.func @transform_0(%arg0: i32) -> (i32, i32) {
    %c0_i32 = arith.constant 0 : i32
    %c0_i32_0 = arith.constant 0 : i32
    return %arg0, %c0_i32 : i32, i32
  }
  func.func @transform_1(%arg0: i32) -> (i32, i32) {
    %c0_i32 = arith.constant 0 : i32
    %c0_i32_0 = arith.constant 0 : i32
    %c0_i32_1 = arith.constant 0 : i32
    return %c0_i32, %c0_i32_0 : i32, i32
  }
  func.func @transform_2(%arg0: i32) -> (i32, i32, i32) {
    %c0_i32 = arith.constant 0 : i32
    %c0_i32_0 = arith.constant 0 : i32
    %c0_i32_1 = arith.constant 0 : i32
    %c0_i32_2 = arith.constant 0 : i32
    return %c0_i32, %c0_i32_0, %c0_i32_1 : i32, i32, i32
  }
  func.func @transform_3(%arg0: i32) -> (i32, i32, i32) {
    %c0_i32 = arith.constant 0 : i32
    %c0_i32_0 = arith.constant 0 : i32
    %c0_i32_1 = arith.constant 0 : i32
    %c0_i32_2 = arith.constant 0 : i32
    return %c0_i32, %c0_i32_0, %c0_i32_1 : i32, i32, i32
  }
  func.func @transform_4(%arg0: i32) -> (i32, i32) {
    %c0_i32 = arith.constant 0 : i32
    %c0_i32_0 = arith.constant 0 : i32
    %c0_i32_1 = arith.constant 0 : i32
    return %c0_i32, %c0_i32_0 : i32, i32
  }
  func.func @transform_5(%arg0: i32) -> (i32, i32) {
    %c0_i32 = arith.constant 0 : i32
    %c0_i32_0 = arith.constant 0 : i32
    return %arg0, %c0_i32 : i32, i32
  }
}

</mosaic_0001>

<bundles_post_ra>
// kernel: tpu_custom_call.1
= control target key start
LH: loop header
LB: loop body
LE: loop exit
PB: predicated region body
PF: predicated region fallthrough
CT: control target
= control target key end

     0   :  { %10 = vsyncpa [#allocation3], 0  ;;  %s4227_s0 = inlined_call_operand.vmem [shape: bf16[128,32], index: 0, kind: input, shape index: {}]   ;;  %s4228_s1 = inlined_call_operand.hbm [shape: bf16[32,384], index: 1, kind: input, shape index: {}]   ;;  %s4229_s2 = inlined_call_operand.hbm [shape: f32[4,64,64], index: 2, kind: input, shape index: {}]   ;;  %s4230_s3 = inlined_call_operand.vmem [shape: bf16[4,32,128], index: 3, kind: input, shape index: {}]   ;;  %s4231_s4 = inlined_call_operand.vmem [shape: f32[1,128], index: 4, kind: input, shape index: {}]   ;;  %s4232_s5 = inlined_call_operand.hbm [shape: f32[128,128], index: 5, kind: output, shape index: {}]  }
   0x1   :  { %11 = vsyncpa [#allocation6], 0 }
   0x2   :  { %12 = vsyncpa [#allocation4], 0 }
   0x3   :  { %14 = vsyncpa [#allocation4 + $0x1], 0  ;;  %s3473_s18 = smov 0   ;;  %s3475_s19 = smov 0  }
   0x4   :  { %s3477_s20 = smov 0   ;;  %s3479_s21 = smov 0  }
   0x5 LB: > { %s3494_s22 = sadd.s32 4294967295, %s3428_s21   ;;  %s2490_s23 = sadd.s32 4294967294, %s3428_s21   ;;  %s3428_s21 = sphi %s3479_s21, %s4250_s21   ;;  %s3424_s20 = sphi %s3477_s20, %s4249_s20   ;;  %s3420_s19 = sphi %s3475_s19, %s4248_s19   ;;  %s3416_s18 = sphi %s3473_s18, %s4247_s18  }
   0x6   : > { %s3498_s24 = sadd.s32 1, %s3428_s21   ;;  %s137_s25 = sadd.s32 1, %s3424_s20 }
   0x7   : > { %s134_s26 = ssub.s32 %s3428_s21, %s3498_s24  ;;  %p147_p0 = scmp.ne.s32.totalorder %s3424_s20, %s3420_s19 }
   0x8   : > { %p135_p1 = scmp.eq.s32.totalorder %s134_s26, 0  ;;  %p148_p2 = scmp.eq.s32.totalorder %s3494_s22, 1 }
   0x9   : > { %p153_p3 = scmp.ne.s32.totalorder %s3420_s19, %s3416_s18  ;;  %p154_p4 = scmp.eq.s32.totalorder %s2490_s23, 1 }
   0xa   : > { %s3509_s27 = scalar_select %p135_p1, %s3424_s20, %s137_s25  }
   0xb   : > { %p3511_p5 = por %p148_p2, %p147_p0  ;;  %p3515_p6 = por %p154_p4, %p153_p3 }
   0xc   : > { %p2491_p7 = scmp.ge.s32.totalorder %s3428_s21, 1  ;;  %p161_p8 = scmp.lt.s32.totalorder %s3428_s21, 3 }
   0xd   : > { %s4236_s28 = scalar_select %p3511_p5, 1, 0 }
   0xe   : > { %s4237_s29 = scalar_select %p3515_p6, 1, 0 }
   0xf   : > { %p4233_p9 = scmp.eq.s32.totalorder %s3494_s22, 0  ;;  %p3522_p10 = pnand %p2491_p7, %p161_p8 }
  0x10   : > { %s3430_s6 = smov [#allocation2]   ;;  %s3431_s9 = smov [#allocation5]  }
  0x11   : > { %s4238_s30 = scalar_select %p3522_p10, 1, 0 }
  0x12   : > { %s173_s7 = sshll.u32 %s3430_s6, 4  ;;  %p2914_p11 = pneg %p3522_p10  ;;  %s174_s7 = int_to_ptr.vmem [resolvable:$true] %s173_s7 }
  0x13   : > { %s186_s10 = sshll.u32 %s3431_s9, 4  ;;  %s3302_s13 = scalar_lea.hbm %s4228_s1, 768  ;;  %s3534_s10 = int_to_ptr.vmem [resolvable:$true] %s186_s10 }
  0x14   : > { %p3530_p12 = pnand %p4233_p9, %p2914_p11  ;;  %p3303_p13 = scmp.ne.s32.totalorder %s4228_s1, %s3302_s13 }
  0x15   : > { %p3309_p3 = scmp.lt.u32.totalorder %s3302_s13, %s4228_s1 }
  0x16   : > { %p3304_p0 = pneg %p3530_p12 }
  0x18   : > { %p3305_p1 = pnand %p3304_p0, %p3303_p13 }
  0x1a   : > { %p3306_p2 = pneg %p3305_p1 }
  0x1c   : > { %p3311_p4 = pnand %p3309_p3, %p3306_p2 }
  0x1e   : > { %3314 = shalt.err (!%p3311_p4)
}
  0x1f   : > { %s3315_s23 = scalar_lea.vmem %s174_s7, 768  ;;  %p3323_p9 = scmp.lt.s32.totalorder %s174_s7, %s174_s7 }
  0x20   : > { %p3316_p7 = scmp.ne.s32.totalorder %s174_s7, %s3315_s23  ;;  %p3324_p6 = scmp.lt.s32.totalorder %s3315_s23, %s3315_s23 }
  0x22   : > { %p3318_p8 = pnand %p3316_p7, %p3304_p0  ;;  %p3325_p5 = por %p3324_p6, %p3323_p9 }
  0x24   : > { %p3319_p11 = pneg %p3318_p8 }
  0x26   : > { %p3326_p10 = pnand %p3325_p5, %p3319_p11 }
  0x28   : > { %3329 = shalt.err (!%p3326_p10)
}
  0x29   : > { %s3432_s25 = smov 192   ;;  %s3433_s26 = smov 12  }
  0x2a   : > { %2917 = dma.hbm_to_vmem [thread:$0]  (!%p3530_p12), %s4228_s1, 768, %s174_s7, [#allocation3], %s3432_s25, %s3432_s25, %s3433_s26  }
  0x2b   : > { %s3330_s13 = scalar_lea.hbm %s4229_s2, 4096 }
  0x2c   : > { %p3331_p13 = scmp.ne.s32.totalorder %s4229_s2, %s3330_s13  ;;  %p3337_p9 = scmp.lt.u32.totalorder %s3330_s13, %s4229_s2 }
  0x2e   : > { %p3333_p5 = pnand %p3331_p13, %p3304_p0 }
  0x30   : > { %p3334_p6 = pneg %p3333_p5 }
  0x32   : > { %p3339_p10 = pnand %p3337_p9, %p3334_p6 }
  0x34   : > { %3342 = shalt.err (!%p3339_p10)
}
  0x35   : > { %s3343_s7 = scalar_lea.vmem %s3534_s10, 4096  ;;  %p3351_p4 = scmp.lt.s32.totalorder %s3534_s10, %s3534_s10 }
  0x36   : > { %p3344_p1 = scmp.ne.s32.totalorder %s3534_s10, %s3343_s7  ;;  %p3352_p7 = scmp.lt.s32.totalorder %s3343_s7, %s3343_s7 }
  0x38   : > { %p3346_p2 = pnand %p3344_p1, %p3304_p0  ;;  %p3353_p8 = por %p3352_p7, %p3351_p4 }
  0x3a   : > { %p3347_p3 = pneg %p3346_p2 }
  0x3c   : > { %p3354_p11 = pnand %p3353_p8, %p3347_p3 }
  0x3e   : > { %3357 = shalt.err (!%p3354_p11)
}
  0x3f   : > { %s3434_s23 = smov 128   ;;  %s3435_s25 = smov 8  }
  0x40   : > { %2920 = dma.hbm_to_vmem [thread:$0]  (!%p3530_p12), %s4229_s2, 4096, %s3534_s10, [#allocation6], %s3434_s23, %s3434_s23, %s3435_s25  }
  0x41   : > { %p4240_p13 = scmp.ne.s32.totalorder %s4238_s30, 0 }
  0x42   : > { %p4241_p0 = scmp.eq.s32.totalorder (!%p4240_p13), %s3494_s22, 0 }
  0x43   : > { %217 = sbr.rel (%p4240_p13) target bundleno = 1363 (0x553), region = 40 }
  0x4a   : > { %3403 = dma.done.wait (%p4241_p0), [#allocation3], 768   ;;  %p4242_p5 = pmov %p4241_p0 }
  0x4b   : > { %p4243_p6 = pmov %p4241_p0 }
  0x4c   : > { %3405 = vsyncadd (%p4242_p5), [#allocation3], 4294966528 }
  0x4d   : > { %3407 = dma.done.wait (%p4243_p6), [#allocation6], 4096   ;;  %p4244_p9 = pmov %p4241_p0 }
  0x4e   : > { %s2499_s8 = sshll.u32 %s3494_s22, 3  ;;  %v3436_v0 = vmov 0   ;;  %v3154_v1 = vld [vmem:[#allocation2 + $0x4] ss:$12 sps:$4 sm:$0xff]   ;;  %v3156_v2 = vld [vmem:[#allocation2] ss:$12 sps:$4 sm:$0xff]  }
  0x4f   : > { %3409 = vsyncadd (%p4244_p9), [#allocation6], 4294963200  ;;  %419 = vmatprep.mubr.bf16.mxu0 %v3436_v0  ;;  %p250_p12 = scmp.lt.s32.totalorder %s2499_s8, 15  ;;  %387 = vmatprep.subr.bf16.mxu0 %v3154_v1  ;;  %v3157_v3 = vld [vmem:[#allocation2 + $0x1c] ss:$12 sps:$4 sm:$0xff]   ;;  %vm374_vm0 = vcmask 261120  }
  0x50   : > { %v3159_v4 = vld [vmem:[#allocation2 + $0x18] ss:$12 sps:$4 sm:$0xff]   ;;  %388 = vmatpush1.bf16.msra.mxu0 %v3156_v2  ;;  %v3164_v6 = vld [vmem:[#allocation2 + $0x8] ss:$12 sps:$4 sm:$0xff]   ;;  %v3165_v7 = vld [vmem:[#allocation2 + $0x20] ss:$12 sps:$4 sm:$0xff]  }
  0x51   : > { %s4252_s8 = smov (!%p250_p12, %s2499_s8), 15  ;;  %389 = vmatprep.subr.bf16.mxu0 %v3157_v3  ;;  %2676 = vmatprep.subr.bf16.mxu1 %v3164_v6  ;;  %s3437_s12 = smov 96   ;;  %vm1201_vm1 = vcmask 523264  }
  0x52   : > { %s2500_s30 = sshll.u32 %s4252_s8, 2  ;;  %2677 = vmatpush3.bf16.msra.mxu1 %v3164_v6  ;;  %s3438_s13 = smov 64  }
  0x53   : > { %s253_s11 = scalar_lea.vmem %s4227_s0, %s2500_s30  ;;  %2678 = vmatprep.subr.bf16.mxu1 %v3165_v7  ;;  %s3439_s14 = smov 32  }
  0x54   : > { %v3160_v5 = vld [vmem:[%s253_s11] sm:$0xff]   ;;  %390 = vmatpush1.bf16.msra.mxu0 %v3159_v4  ;;  %v3161_v8 = vld [vmem:[%s253_s11 + $0x8] sm:$0xff]   ;;  %v3162_v9 = vld [vmem:[%s253_s11 + $0x10] sm:$0xff]   ;;  %s246_s15 = sand.u32 1, %s3420_s19   ;;  %s2581_s26 = sshll.u32 %s3494_s22, 10 }
  0x55   : > { %2680 = vmatprep.mubr.msk.bf16.mxu1 %vm374_vm0, %v3160_v5  ;;  %v3163_v10 = vld [vmem:[%s253_s11 + $0x18] sm:$0xff]   ;;  %s2498_s16 = sshll.u32 %s246_s15, 6  ;;  %s4182_s30 = scalar_lea.hbm %s4232_s5, %s2581_s26 }
  0x56   : > { %2679 = vmatpush3.bf16.msra.mxu1 %v3165_v7  ;;  %s248_s23 = scalar_lea.vmem [#allocation7], %s2498_s16  ;;  %s4186_s22 = scalar_lea.sflag [#allocation4], %s246_s15 }
  0x57   : > { %2511 = vmatmul.mubr.msk.bf16.vlgmr.msra.gmra.mrb[0].mxu0 %vm374_vm0, %v3160_v5  ;;  %s2406_s25 = sshll.u32 %s248_s23, 4  ;;  %p4245_p1 = scmp.ne.s32.totalorder %s4236_s28, 0  ;;  %s4177_s25 = int_to_ptr.vmem [resolvable:$true] %s2406_s25 }
  0x58   : > { %429 = vmatprep.mubr.bf16.mxu0 %v3436_v0  ;;  %s3358_s10 = scalar_lea.vmem %s4177_s25, 1024  ;;  %s3440_s9 = smov [#allocation7]  }
  0x59   : > { %2681 = vmatmul.mubr.msk.bf16.vlgmr.msra.gmra.mrb[0].mxu1 %vm374_vm0, %v3161_v8  ;;  %p3359_p10 = scmp.ne.s32.totalorder %s4177_s25, %s3358_s10  ;;  %s3362_s11 = sshll.u32 %s3440_s9, 4  ;;  %s3363_s11 = int_to_ptr.vmem [resolvable:$false] %s3362_s11 }
  0x5a   : > { %2684 = vmatprep.mubr.msk.bf16.mxu1 %vm374_vm0, %v3162_v9  ;;  %p3365_p4 = scmp.lt.s32.totalorder %s4177_s25, %s3363_s11 }
  0x5b   : > { %p3360_p2 = pnand %p3359_p10, %p4245_p1 }
  0x5d   : > { %p3361_p3 = pneg %p3360_p2 }
  0x5f   : > { %2512 = vmatmul.mubr.msk.bf16.gmra.mrb[4].mxu0 %vm374_vm0, %v3161_v8 }
  0x60   : > { %439 = vmatprep.mubr.bf16.mxu0 %v3436_v0 }
  0x61   : > { %2685 = vmatmul.mubr.msk.bf16.gmra.mrb[4].mxu1 %vm374_vm0, %v3163_v10 }
  0x67   : > { %2513 = vmatmul.mubr.msk.bf16.gmra.mrb[8].mxu0 %vm374_vm0, %v3162_v9 }
  0x68   : > { %449 = vmatprep.mubr.bf16.mxu0 %v3436_v0 }
  0x6f   : > { %2514 = vmatmul.mubr.msk.bf16.gmra.mrb[12].mxu0 %vm374_vm0, %v3163_v10 }
 0x12a   : > { %v421_v11 = vpop.f32.mrb[0].mxu0 }
 0x12b   : > { %v423_v12 = vpop.f32.mrb[1].mxu0 }
 0x12c   : > { %v425_v13 = vpop.f32.mrb[2].mxu0  ;;  %v2682_v47 = vpop.f32.mrb[0].mxu1 }
 0x12d   : > { %v605_v14 = vpack.c.bf16 %v425_v13, %v421_v11  ;;  %v427_v15 = vpop.f32.mrb[3].mxu0  ;;  %v3605_v16 = vpack.i.bf16 %v425_v13, %v421_v11  ;;  %v494_v48 = vpop.f32.mrb[1].mxu1 }
 0x12e   : > { %v701_v17 = vpack.c.bf16 %v427_v15, %v423_v12  ;;  %v2974_v18 = vpack.i.bf16 %v427_v15, %v423_v12  ;;  %v2683_v49 = vpop.f32.mrb[2].mxu1 }
 0x12f   : > { %2696 = vmatprep.mubr.msk.bf16.mxu1 %vm374_vm0, %v605_v14  ;;  %v497_v50 = vpop.f32.mrb[3].mxu1  ;;  %v3099_v53 = vpack.i.bf16 %v2683_v49, %v2682_v47  ;;  %v3672_v14 = vpack.c.bf16 %v2683_v49, %v2682_v47 }
 0x130   : > { %2975 = vrot.lane.b32.xlu0 %v2974_v18, %s3437_s12  ;;  %2888 = vmatprep.subr.msk.bf16.mxu1 %vm374_vm0, %v701_v17  ;;  %v826_v19 = vsel %vm374_vm0, %v701_v17, 0  ;;  %v3094_v51 = vpack.i.bf16 %v497_v50, %v494_v48  ;;  %v3670_v13 = vpack.c.bf16 %v497_v50, %v494_v48 }
 0x131   : > { %2689 = vmatpush3.bf16.xpose.msra.mxu1 %v826_v19 }
 0x132   : > { %v431_v20 = vpop.f32.mrb[4].mxu0 }
 0x133   : > { %v433_v21 = vpop.f32.mrb[5].mxu0 }
 0x134   : > { %v435_v22 = vpop.f32.mrb[6].mxu0  ;;  %v2686_v52 = vpop.f32.mrb[4].mxu1 }
 0x135   : > { %v606_v23 = vpack.c.bf16 %v435_v22, %v431_v20  ;;  %v437_v24 = vpop.f32.mrb[7].mxu0  ;;  %v3009_v25 = vpack.i.bf16 %v435_v22, %v431_v20  ;;  %v510_v54 = vpop.f32.mrb[5].mxu1 }
 0x136   : > { %v702_v26 = vpack.c.bf16 %v437_v24, %v433_v21  ;;  %v2979_v27 = vpack.i.bf16 %v437_v24, %v433_v21  ;;  %v2687_v55 = vpop.f32.mrb[6].mxu1 }
 0x137   : > { %v513_v56 = vpop.f32.mrb[7].mxu1  ;;  %v3647_v57 = vpack.i.bf16 %v2687_v55, %v2686_v52 }
 0x138   : > { %2980 = vrot.lane.b32.xlu0 %v2979_v27, %s3437_s12  ;;  %2889 = vmatprep.subr.msk.bf16.mxu1 %vm374_vm0, %v702_v26  ;;  %v829_v28 = vsel %vm374_vm0, %v702_v26, 0  ;;  %v3649_v58 = vpack.i.bf16 %v513_v56, %v510_v54  ;;  %v3674_v15 = vpack.c.bf16 %v513_v56, %v510_v54 }
 0x139   : > { %2691 = vmatpush3.bf16.xpose.msra.mxu1 %v829_v28 }
 0x13a   : > { %v441_v29 = vpop.f32.mrb[8].mxu0 }
 0x13b   : > { %v443_v30 = vpop.f32.mrb[9].mxu0 }
 0x13c   : > { %v445_v31 = vpop.f32.mrb[10].mxu0 }
 0x13d   : > { %v607_v32 = vpack.c.bf16 %v445_v31, %v441_v29  ;;  %v447_v33 = vpop.f32.mrb[11].mxu0  ;;  %v3024_v34 = vpack.i.bf16 %v445_v31, %v441_v29 }
 0x13e   : > { %v703_v35 = vpack.c.bf16 %v447_v33, %v443_v30  ;;  %v2984_v36 = vpack.i.bf16 %v447_v33, %v443_v30 }
 0x140   : > { %2985 = vrot.lane.b32.xlu1 %v2984_v36, %s3437_s12  ;;  %2890 = vmatprep.subr.msk.bf16.mxu1 %vm374_vm0, %v703_v35  ;;  %v832_v37 = vsel %vm374_vm0, %v703_v35, 0 }
 0x141   : > { %2693 = vmatpush3.bf16.xpose.msra.mxu1 %v832_v37 }
 0x142   : > { %v451_v38 = vpop.f32.mrb[12].mxu0 }
 0x143   : > { %v453_v39 = vpop.f32.mrb[13].mxu0 }
 0x144   : > { %2990 = vrot.lane.b32.xlu1 %v2974_v18, %s3438_s13  ;;  %v455_v40 = vpop.f32.mrb[14].mxu0 }
 0x145   : > { %v608_v41 = vpack.c.bf16 %v455_v40, %v451_v38  ;;  %v457_v42 = vpop.f32.mrb[15].mxu0  ;;  %v3029_v43 = vpack.i.bf16 %v455_v40, %v451_v38 }
 0x146   : > { %v704_v44 = vpack.c.bf16 %v457_v42, %v453_v39  ;;  %v2999_v45 = vpack.i.bf16 %v457_v42, %v453_v39 }
 0x148   : > { %2995 = vrot.lane.b32.xlu1 %v2979_v27, %s3438_s13  ;;  %3000 = vrot.lane.b32.xlu0 %v2999_v45, %s3437_s12  ;;  %v835_v46 = vsel %vm374_vm0, %v704_v44, 0 }
 0x149   : > { %2891 = vmatprep.subr.msk.bf16.mxu1 %vm374_vm0, %v704_v44 }
 0x14a   : > { %2695 = vmatpush3.bf16.xpose.msra.mxu1 %v835_v46 }
 0x14c   : > { %3010 = vrot.lane.b32.xlu1 %v3009_v25, %s3437_s12  ;;  %3005 = vrot.lane.b32.xlu0 %v3605_v16, %s3437_s12 }
 0x150   : > { %3020 = vrot.lane.b32.xlu1 %v2974_v18, %s3439_s14  ;;  %3015 = vrot.lane.b32.xlu0 %v2984_v36, %s3438_s13 }
 0x151   : > { %2697 = vmatmul.mubr.msk.bf16.vlgmr.msra.gmra.mrb[8].mxu1 %vm374_vm0, %v606_v23 }
 0x152   : > { %2700 = vmatprep.mubr.msk.bf16.mxu1 %vm374_vm0, %v607_v32 }
 0x154   : > { %3030 = vrot.lane.b32.xlu1 %v3029_v43, %s3437_s12  ;;  %3025 = vrot.lane.b32.xlu0 %v3024_v34, %s3437_s12 }
 0x158   : > { %3035 = vrot.lane.b32.xlu1 %v2979_v27, %s3439_s14  ;;  %3040 = vrot.lane.b32.xlu0 %v2999_v45, %s3438_s13 }
 0x159   : > { %2701 = vmatmul.mubr.msk.bf16.gmra.mrb[12].mxu1 %vm374_vm0, %v608_v41 }
 0x15c   : > { %3050 = vrot.lane.b32.xlu1 %v3009_v25, %s3438_s13  ;;  %3045 = vrot.lane.b32.xlu0 %v3605_v16, %s3438_s13 }
 0x160   : > { %3060 = vrot.lane.b32.xlu1 %v3024_v34, %s3438_s13  ;;  %3055 = vrot.lane.b32.xlu0 %v2984_v36, %s3439_s14 }
 0x164   : > { %3070 = vrot.lane.b32.xlu1 %v2999_v45, %s3439_s14  ;;  %3065 = vrot.lane.b32.xlu0 %v3029_v43, %s3438_s13 }
 0x168   : > { %3080 = vrot.lane.b32.xlu1 %v3009_v25, %s3439_s14  ;;  %3075 = vrot.lane.b32.xlu0 %v3605_v16, %s3439_s14  ;;  %v3676_v16 = vpack.c.bf16 %v2687_v55, %v2686_v52 }
 0x16c   : > { %3090 = vrot.lane.b32.xlu1 %v3029_v43, %s3439_s14  ;;  %3085 = vrot.lane.b32.xlu0 %v3024_v34, %s3439_s14 }
 0x170   : > { %3095 = vrot.lane.b32.xlu1 %v3094_v51, %s3437_s12  ;;  %3105 = vrot.lane.b32.xlu0 %v3649_v58, %s3437_s12 }
 0x174   : > { %3100 = vrot.lane.b32.xlu1 %v3099_v53, %s3437_s12  ;;  %3115 = vrot.lane.b32.xlu0 %v3094_v51, %s3438_s13 }
 0x178   : > { %3110 = vrot.lane.b32.xlu1 %v3647_v57, %s3437_s12  ;;  %3120 = vrot.lane.b32.xlu0 %v3099_v53, %s3438_s13  ;;  %s3364_s12 = scalar_lea.vmem %s3363_s11, 2048 }
 0x179   : > { %p3366_p7 = scmp.lt.s32.totalorder %s3364_s12, %s3358_s10 }
 0x17b   : > { %p3367_p8 = por %p3366_p7, %p3365_p4 }
 0x17c   : > { %3125 = vrot.lane.b32.xlu1 %v3649_v58, %s3438_s13  ;;  %3130 = vrot.lane.b32.xlu0 %v3647_v57, %s3438_s13 }
 0x17d   : > { %p3368_p11 = pnand %p3367_p8, %p3361_p3 }
 0x180   : > { %3135 = vrot.lane.b32.xlu1 %v3094_v51, %s3439_s14 }
 0x184   : > { %3140 = vrot.lane.b32.xlu1 %v3099_v53, %s3439_s14 }
 0x1a2   : > { %v2976_v59 = vpop.permute.xlu0 %2975 }
 0x1a3   : > { %v2978_v60 = vunpack.i.h.bf16 %v2976_v59  ;;  %v2977_v61 = vunpack.i.l.bf16 %v2976_v59 }
 0x1a5   : > { %v705_v62 = vpack.c.bf16 %v2978_v60, %v2977_v61 }
 0x1a7   : > { %2892 = vmatprep.subr.msk.bf16.mxu1 %vm374_vm0, %v705_v62  ;;  %v915_v63 = vsel %vm374_vm0, %v705_v62, 0 }
 0x1a8   : > { %2705 = vmatpush3.bf16.xpose.msra.mxu1 %v915_v63 }
 0x1aa   : > { %v2981_v0 = vpop.permute.xlu0 %2980 }
 0x1ab   : > { %v2983_v1 = vunpack.i.h.bf16 %v2981_v0  ;;  %v2982_v2 = vunpack.i.l.bf16 %v2981_v0 }
 0x1ad   : > { %v706_v3 = vpack.c.bf16 %v2983_v1, %v2982_v2 }
 0x1af   : > { %2893 = vmatprep.subr.msk.bf16.mxu1 %vm374_vm0, %v706_v3  ;;  %v918_v4 = vsel %vm374_vm0, %v706_v3, 0 }
 0x1b0   : > { %2707 = vmatpush3.bf16.xpose.msra.mxu1 %v918_v4 }
 0x1b2   : > { %v2986_v5 = vpop.permute.xlu1 %2985 }
 0x1b3   : > { %v2988_v6 = vunpack.i.h.bf16 %v2986_v5  ;;  %v2987_v7 = vunpack.i.l.bf16 %v2986_v5 }
 0x1b5   : > { %v707_v8 = vpack.c.bf16 %v2988_v6, %v2987_v7 }
 0x1b6   : > { %v2991_v9 = vpop.permute.xlu1 %2990 }
 0x1b7   : > { %v2993_v10 = vunpack.i.h.bf16 %v2991_v9  ;;  %v2992_v11 = vunpack.i.l.bf16 %v2991_v9  ;;  %2894 = vmatprep.subr.msk.bf16.mxu1 %vm374_vm0, %v707_v8  ;;  %v921_v12 = vsel %vm374_vm0, %v707_v8, 0 }
 0x1b8   : > { %2709 = vmatpush3.bf16.xpose.msra.mxu1 %v921_v12 }
 0x1b9   : > { %v709_v17 = vpack.c.bf16 %v2993_v10, %v2992_v11 }
 0x1ba   : > { %v2996_v18 = vpop.permute.xlu1 %2995  ;;  %v3001_v19 = vpop.permute.xlu0 %3000 }
 0x1bb   : > { %v2998_v20 = vunpack.i.h.bf16 %v2996_v18  ;;  %v2997_v21 = vunpack.i.l.bf16 %v2996_v18  ;;  %v3003_v22 = vunpack.i.h.bf16 %v3001_v19  ;;  %v3002_v23 = vunpack.i.l.bf16 %v3001_v19  ;;  %2896 = vmatprep.subr.msk.bf16.mxu0 %vm374_vm0, %v709_v17 }
 0x1bc   : > { %v1004_v24 = vsel %vm374_vm0, %v709_v17, 0 }
 0x1bd   : > { %v710_v25 = vpack.c.bf16 %v2998_v20, %v2997_v21  ;;  %v708_v26 = vpack.c.bf16 %v3003_v22, %v3002_v23  ;;  %2721 = vmatpush3.bf16.xpose.msra.mxu0 %v1004_v24 }
 0x1be   : > { %v3011_v27 = vpop.permute.xlu1 %3010  ;;  %v3006_v28 = vpop.permute.xlu0 %3005 }
 0x1bf   : > { %v3008_v29 = vunpack.i.h.bf16 %v3006_v28  ;;  %v3007_v30 = vunpack.i.l.bf16 %v3006_v28  ;;  %2895 = vmatprep.subr.msk.bf16.mxu1 %vm374_vm0, %v708_v26  ;;  %2897 = vmatprep.subr.msk.bf16.mxu0 %vm374_vm0, %v710_v25  ;;  %v924_v31 = vsel %vm374_vm0, %v708_v26, 0  ;;  %v3013_v33 = vunpack.i.h.bf16 %v3011_v27 }
 0x1c0   : > { %2711 = vmatpush3.bf16.xpose.msra.mxu1 %v924_v31  ;;  %v3012_v34 = vunpack.i.l.bf16 %v3011_v27  ;;  %v1007_v41 = vsel %vm374_vm0, %v710_v25, 0 }
 0x1c1   : > { %v609_v32 = vpack.c.bf16 %v3008_v29, %v3007_v30 }
 0x1c2   : > { %v3021_v35 = vpop.permute.xlu1 %3020  ;;  %v3016_v36 = vpop.permute.xlu0 %3015  ;;  %v610_v44 = vpack.c.bf16 %v3013_v33, %v3012_v34 }
 0x1c3   : > { %v3023_v37 = vunpack.i.h.bf16 %v3021_v35  ;;  %v3022_v38 = vunpack.i.l.bf16 %v3021_v35  ;;  %v3018_v39 = vunpack.i.h.bf16 %v3016_v36  ;;  %v3017_v40 = vunpack.i.l.bf16 %v3016_v36  ;;  %2712 = vmatprep.mubr.msk.bf16.mxu1 %vm374_vm0, %v609_v32 }
 0x1c5   : > { %v713_v42 = vpack.c.bf16 %v3023_v37, %v3022_v38  ;;  %v711_v43 = vpack.c.bf16 %v3018_v39, %v3017_v40  ;;  %2723 = vmatpush3.bf16.xpose.msra.mxu0 %v1007_v41 }
 0x1c6   : > { %v3031_v45 = vpop.permute.xlu1 %3030  ;;  %v3026_v46 = vpop.permute.xlu0 %3025 }
 0x1c7   : > { %v3028_v47 = vunpack.i.h.bf16 %v3026_v46  ;;  %v3027_v48 = vunpack.i.l.bf16 %v3026_v46  ;;  %2898 = vmatprep.subr.msk.bf16.mxu0 %vm374_vm0, %v711_v43  ;;  %2900 = vmatprep.subr.msk.bf16.mxu1 %vm374_vm0, %v713_v42  ;;  %v1093_v49 = vsel %vm374_vm0, %v713_v42, 0  ;;  %v3033_v51 = vunpack.i.h.bf16 %v3031_v45 }
 0x1c8   : > { %2713 = vmatmul.mubr.msk.bf16.vlgmr.msra.gmra.mrb[16].mxu1 %vm374_vm0, %v610_v44  ;;  %v3032_v52 = vunpack.i.l.bf16 %v3031_v45  ;;  %v1010_v61 = vsel %vm374_vm0, %v711_v43, 0 }
 0x1c9   : > { %v611_v50 = vpack.c.bf16 %v3028_v47, %v3027_v48  ;;  %2737 = vmatpush3.bf16.xpose.msra.mxu1 %v1093_v49 }
 0x1ca   : > { %v3036_v53 = vpop.permute.xlu1 %3035  ;;  %v3041_v54 = vpop.permute.xlu0 %3040  ;;  %v612_v0 = vpack.c.bf16 %v3033_v51, %v3032_v52  ;;  %v273_v52 = vld [vmem:[#allocation5] sm:$0xff] }
 0x1cb   : > { %v3038_v55 = vunpack.i.h.bf16 %v3036_v53  ;;  %v3037_v56 = vunpack.i.l.bf16 %v3036_v53  ;;  %v3043_v59 = vunpack.i.h.bf16 %v3041_v54  ;;  %v3042_v60 = vunpack.i.l.bf16 %v3041_v54  ;;  %2716 = vmatprep.mubr.msk.bf16.mxu1 %vm374_vm0, %v611_v50 }
 0x1cd   : > { %v714_v62 = vpack.c.bf16 %v3038_v55, %v3037_v56  ;;  %v712_v63 = vpack.c.bf16 %v3043_v59, %v3042_v60  ;;  %2725 = vmatpush3.bf16.xpose.msra.mxu0 %v1010_v61  ;;  %v274_v56 = vld [vmem:[#allocation5 + $0x8] sm:$0xff] }
 0x1ce   : > { %v3051_v1 = vpop.permute.xlu1 %3050  ;;  %v3046_v2 = vpop.permute.xlu0 %3045 }
 0x1cf   : > { %v3048_v3 = vunpack.i.h.bf16 %v3046_v2  ;;  %v3047_v4 = vunpack.i.l.bf16 %v3046_v2  ;;  %2899 = vmatprep.subr.msk.bf16.mxu0 %vm374_vm0, %v712_v63  ;;  %2901 = vmatprep.subr.msk.bf16.mxu1 %vm374_vm0, %v714_v62  ;;  %v1096_v5 = vsel %vm374_vm0, %v714_v62, 0  ;;  %v1013_v11 = vsel %vm374_vm0, %v712_v63, 0 }
 0x1d0   : > { %2717 = vmatmul.mubr.msk.bf16.gmra.mrb[20].mxu1 %vm374_vm0, %v612_v0  ;;  %v3053_v17 = vunpack.i.h.bf16 %v3051_v1  ;;  %v3052_v18 = vunpack.i.l.bf16 %v3051_v1 }
 0x1d1   : > { %v613_v6 = vpack.c.bf16 %v3048_v3, %v3047_v4  ;;  %2739 = vmatpush3.bf16.xpose.msra.mxu1 %v1096_v5  ;;  %v276_v4 = vld [vmem:[#allocation5 + $0x18] sm:$0xff] }
 0x1d2   : > { %v3061_v7 = vpop.permute.xlu1 %3060  ;;  %v3056_v8 = vpop.permute.xlu0 %3055  ;;  %v614_v27 = vpack.c.bf16 %v3053_v17, %v3052_v18 }
 0x1d3   : > { %v3058_v9 = vunpack.i.h.bf16 %v3056_v8  ;;  %v3057_v10 = vunpack.i.l.bf16 %v3056_v8  ;;  %2728 = vmatprep.mubr.msk.bf16.mxu0 %vm374_vm0, %v613_v6  ;;  %v3063_v21 = vunpack.i.h.bf16 %v3061_v7  ;;  %v3062_v22 = vunpack.i.l.bf16 %v3061_v7 }
 0x1d5   : > { %v715_v12 = vpack.c.bf16 %v3058_v9, %v3057_v10  ;;  %2727 = vmatpush3.bf16.xpose.msra.mxu0 %v1013_v11  ;;  %v615_v29 = vpack.c.bf16 %v3063_v21, %v3062_v22 }
 0x1d6   : > { %v3071_v19 = vpop.permute.xlu1 %3070  ;;  %v3066_v20 = vpop.permute.xlu0 %3065  ;;  %2752 = vmatprep.subr.bf16.mxu0 %v3670_v13 }
 0x1d7   : > { %v3073_v23 = vunpack.i.h.bf16 %v3071_v19  ;;  %v3072_v24 = vunpack.i.l.bf16 %v3071_v19  ;;  %2902 = vmatprep.subr.msk.bf16.mxu1 %vm374_vm0, %v715_v12  ;;  %v1099_v25 = vsel %vm374_vm0, %v715_v12, 0  ;;  %v3068_v33 = vunpack.i.h.bf16 %v3066_v20  ;;  %v279_v12 = vld [vmem:[#allocation5 + $0x30] sm:$0xff] }
 0x1d8   : > { %v3067_v34 = vunpack.i.l.bf16 %v3066_v20 }
 0x1d9   : > { %v716_v26 = vpack.c.bf16 %v3073_v23, %v3072_v24  ;;  %2741 = vmatpush3.bf16.xpose.msra.mxu1 %v1099_v25  ;;  %v277_v23 = vld [vmem:[#allocation5 + $0x20] sm:$0xff]  ;;  %v280_v24 = vld [vmem:[#allocation5 + $0x38] sm:$0xff] }
 0x1da   : > { %v3076_v28 = vpop.permute.xlu0 %3075  ;;  %v3081_v35 = vpop.permute.xlu1 %3080  ;;  %v616_v38 = vpack.c.bf16 %v3068_v33, %v3067_v34 }
 0x1db   : > { %v3078_v30 = vunpack.i.h.bf16 %v3076_v28  ;;  %v3077_v31 = vunpack.i.l.bf16 %v3076_v28  ;;  %2903 = vmatprep.subr.msk.bf16.mxu1 %vm374_vm0, %v716_v26  ;;  %v1102_v37 = vsel %vm374_vm0, %v716_v26, 0  ;;  %v3083_v39 = vunpack.i.h.bf16 %v3081_v35 }
 0x1dc   : > { %2729 = vmatmul.mubr.msk.bf16.vlgmr.msra.gmra.mrb[16].mxu0 %vm374_vm0, %v614_v27  ;;  %v3082_v40 = vunpack.i.l.bf16 %v3081_v35  ;;  %v278_v35 = vld [vmem:[#allocation5 + $0x28] sm:$0xff] }
 0x1dd   : > { %v617_v32 = vpack.c.bf16 %v3078_v30, %v3077_v31  ;;  %2732 = vmatprep.mubr.msk.bf16.mxu0 %vm374_vm0, %v615_v29  ;;  %2753 = vmatpush3.bf16.msra.mxu0 %v3670_v13 }
 0x1de   : > { %2754 = vmatprep.subr.bf16.mxu0 %v3672_v14  ;;  %v3086_v36 = vpop.permute.xlu0 %3085  ;;  %v618_v42 = vpack.c.bf16 %v3083_v39, %v3082_v40  ;;  %v3091_v43 = vpop.permute.xlu1 %3090 }
 0x1df   : > { %2744 = vmatprep.mubr.msk.bf16.mxu1 %vm374_vm0, %v617_v32  ;;  %v3088_v41 = vunpack.i.h.bf16 %v3086_v36  ;;  %v3087_v13 = vunpack.i.l.bf16 %v3086_v36  ;;  %v3092_v45 = vunpack.i.l.bf16 %v3091_v43 }
 0x1e1   : > { %2743 = vmatpush3.bf16.xpose.msra.mxu1 %v1102_v37  ;;  %2755 = vmatpush3.bf16.msra.mxu0 %v3672_v14  ;;  %v619_v44 = vpack.c.bf16 %v3088_v41, %v3087_v13  ;;  %v3093_v14 = vunpack.i.h.bf16 %v3091_v43  ;;  %v283_v43 = vld [vmem:[#allocation5 + $0x50] sm:$0xff] }
 0x1e2   : > { %2756 = vmatprep.subr.bf16.mxu0 %v3674_v15  ;;  %v3096_v47 = vpop.permute.xlu1 %3095  ;;  %v3106_v60 = vpop.permute.xlu0 %3105 }
 0x1e3   : > { %v620_v46 = vpack.c.bf16 %v3093_v14, %v3092_v45  ;;  %v3098_v48 = vunpack.i.h.bf16 %v3096_v47  ;;  %v3097_v49 = vunpack.i.l.bf16 %v3096_v47  ;;  %v3108_v62 = vunpack.i.h.bf16 %v3106_v60  ;;  %v281_v14 = vld [vmem:[#allocation5 + $0x40] sm:$0xff] }
 0x1e4   : > { %2733 = vmatmul.mubr.msk.bf16.gmra.mrb[20].mxu0 %vm374_vm0, %v616_v38  ;;  %v3107_v63 = vunpack.i.l.bf16 %v3106_v60 }
 0x1e5   : > { %2757 = vmatpush3.bf16.msra.mxu0 %v3674_v15  ;;  %v275_v15 = vld [vmem:[#allocation5 + $0x10] sm:$0xff]  ;;  %v801_v50 = vpack.c.bf16 %v3098_v48, %v3097_v49 }
 0x1e6   : > { %2758 = vmatprep.subr.bf16.mxu0 %v3676_v16  ;;  %v3101_v53 = vpop.permute.xlu1 %3100  ;;  %v803_v6 = vpack.c.bf16 %v3108_v62, %v3107_v63  ;;  %v3116_v10 = vpop.permute.xlu0 %3115  ;;  %v289_v63 = vld [vmem:[#allocation5 + $0x80] sm:$0xff] }
 0x1e7   : > { %2768 = vmatprep.subr.bf16.mxu1 %v801_v50  ;;  %v3102_v59 = vunpack.i.l.bf16 %v3101_v53  ;;  %v3118_v17 = vunpack.i.h.bf16 %v3116_v10  ;;  %v3117_v18 = vunpack.i.l.bf16 %v3116_v10  ;;  %v284_v10 = vld [vmem:[#allocation5 + $0x58] sm:$0xff] }
 0x1e8   : > { %2745 = vmatmul.mubr.msk.bf16.vlgmr.msra.gmra.mrb[24].mxu1 %vm374_vm0, %v618_v42 }
 0x1e9   : > { %2748 = vmatprep.mubr.msk.bf16.mxu1 %vm374_vm0, %v619_v44  ;;  %2759 = vmatpush3.bf16.msra.mxu0 %v3676_v16  ;;  %v3103_v16 = vunpack.i.h.bf16 %v3101_v53  ;;  %v3730_v25 = vpack.c.bf16 %v3118_v17, %v3117_v18  ;;  %v285_v18 = vld [vmem:[#allocation5 + $0x60] sm:$0xff] }
 0x1ea   : > { %2769 = vmatpush3.bf16.msra.mxu1 %v801_v50  ;;  %v3111_v7 = vpop.permute.xlu1 %3110  ;;  %v287_v50 = vld [vmem:[#allocation5 + $0x70] sm:$0xff]  ;;  %v3772_v60 = vpop.permute.xlu0 %3120 }
 0x1eb   : > { %v802_v3 = vpack.c.bf16 %v3103_v16, %v3102_v59  ;;  %v3113_v8 = vunpack.i.h.bf16 %v3111_v7  ;;  %v3112_v9 = vunpack.i.l.bf16 %v3111_v7  ;;  %2784 = vmatprep.subr.bf16.mxu0 %v3730_v25 }
 0x1ed   : > { %2770 = vmatprep.subr.bf16.mxu1 %v802_v3  ;;  %v804_v21 = vpack.c.bf16 %v3113_v8, %v3112_v9 }
 0x1ee   : > { %2771 = vmatpush3.bf16.msra.mxu1 %v802_v3  ;;  %v3732_v26 = vpop.permute.xlu1 %3125 }
 0x1ef   : > { %2772 = vmatprep.subr.bf16.mxu1 %v803_v6 }
 0x1f0   : > { %2749 = vmatmul.mubr.msk.bf16.gmra.mrb[28].mxu1 %vm374_vm0, %v620_v46 }
 0x1f2   : > { %2773 = vmatpush3.bf16.msra.mxu1 %v803_v6  ;;  %v3136_v36 = vpop.permute.xlu1 %3135 }
 0x1f3   : > { %2774 = vmatprep.subr.bf16.mxu1 %v804_v21  ;;  %v3138_v37 = vunpack.i.h.bf16 %v3136_v36  ;;  %v3137_v38 = vunpack.i.l.bf16 %v3136_v36  ;;  %v282_v36 = vld [vmem:[#allocation5 + $0x48] sm:$0xff] }
 0x1f5   : > { %v3751_v13 = vpack.c.bf16 %v3138_v37, %v3137_v38 }
 0x1f6   : > { %2775 = vmatpush3.bf16.msra.mxu1 %v804_v21  ;;  %v3782_v9 = vpop.permute.xlu1 %3140  ;;  %v292_v21 = vld [vmem:[#allocation5 + $0x98] sm:$0xff] }
 0x1f7   : > { %2800 = vmatprep.subr.bf16.mxu1 %v3751_v13 }
 0x224   : > { %v2698_v51 = vpop.f32.mrb[8].mxu1 }
 0x225   : > { %v3716_v54 = vadd.f32 %v2698_v51, %v275_v15  ;;  %v871_v55 = vpop.f32.mrb[9].mxu1 }
 0x226   : > { %v2699_v61 = vpop.f32.mrb[10].mxu1  ;;  %v3718_v0 = vadd.f32 %v871_v55, %v273_v52 }
 0x227   : > { %v874_v1 = vpop.f32.mrb[11].mxu1  ;;  %v1208_v2 = vsel %vm1201_vm1, %v3716_v54, -inf  ;;  %v3726_v19 = vadd.f32 %v2699_v61, %v276_v4  ;;  %v291_v61 = vld [vmem:[#allocation5 + $0x90] sm:$0xff] }
 0x228   : > { %v3722_v5 = vadd.f32 %v874_v1, %v274_v56  ;;  %1209 = vmax.xlane.f32.xlu0 %v1208_v2  ;;  %v1202_v20 = vsel %vm1201_vm1, %v3718_v0, -inf  ;;  %v3774_v1 = vpop.permute.xlu0 %3130 }
 0x229   : > { %v1211_v33 = vsel %vm1201_vm1, %v3726_v19, -inf }
 0x22a   : > { %v1205_v11 = vsel %vm1201_vm1, %v3722_v5, -inf }
 0x22b   : > { %1206 = vmax.xlane.f32.xlu1 %v1205_v11 }
 0x22c   : > { %1203 = vmax.xlane.f32.xlu0 %v1202_v20  ;;  %v2702_v22 = vpop.f32.mrb[12].mxu1 }
 0x22d   : > { %v3734_v27 = vadd.f32 %v2702_v22, %v279_v12  ;;  %v887_v28 = vpop.f32.mrb[13].mxu1  ;;  %v295_v12 = vld [vmem:[#allocation5 + $0xb0] sm:$0xff] }
 0x22e   : > { %v2703_v29 = vpop.f32.mrb[14].mxu1  ;;  %v3737_v30 = vadd.f32 %v887_v28, %v277_v23 }
 0x22f   : > { %v3739_v31 = vadd.f32 %v2703_v29, %v280_v24  ;;  %v890_v32 = vpop.f32.mrb[15].mxu1  ;;  %v1220_v34 = vsel %vm1201_vm1, %v3734_v27, -inf }
 0x230   : > { %1212 = vmax.xlane.f32.xlu0 %v1211_v33  ;;  %1221 = vmax.xlane.f32.xlu1 %v1220_v34  ;;  %v3745_v39 = vadd.f32 %v890_v32, %v278_v35  ;;  %v1214_v40 = vsel %vm1201_vm1, %v3737_v30, -inf }
 0x231   : > { %v1223_v41 = vsel %vm1201_vm1, %v3739_v31, -inf }
 0x232   : > { %v1217_v42 = vsel %vm1201_vm1, %v3745_v39, -inf }
 0x234   : > { %1215 = vmax.xlane.f32.xlu1 %v1214_v40  ;;  %1224 = vmax.xlane.f32.xlu0 %v1223_v41 }
 0x238   : > { %1218 = vmax.xlane.f32.xlu0 %v1217_v42 }
 0x29b   : > { %v2714_v44 = vpop.f32.mrb[16].mxu1 }
 0x29c   : > { %v3756_v45 = vadd.f32 %v2714_v44, %v283_v43  ;;  %v960_v46 = vpop.f32.mrb[17].mxu1  ;;  %v293_v43 = vld [vmem:[#allocation5 + $0xa0] sm:$0xff] }
 0x29d   : > { %v2715_v47 = vpop.f32.mrb[18].mxu1  ;;  %v3758_v48 = vadd.f32 %v960_v46, %v281_v14 }
 0x29e   : > { %v963_v49 = vpop.f32.mrb[19].mxu1  ;;  %v1232_v15 = vsel %vm1201_vm1, %v3756_v45, -inf  ;;  %v3784_v17 = vadd.f32 %v2715_v47, %v284_v10 }
 0x29f   : > { %1233 = vmax.xlane.f32.xlu1 %v1232_v15  ;;  %v1226_v51 = vsel %vm1201_vm1, %v3758_v48, -inf  ;;  %v3805_v46 = vadd.f32 %v963_v49, %v282_v36 }
 0x2a0   : > { %v1235_v41 = vsel %vm1201_vm1, %v3784_v17, -inf }
 0x2a3   : > { %1227 = vmax.xlane.f32.xlu1 %v1226_v51  ;;  %v2718_v52 = vpop.f32.mrb[20].mxu1  ;;  %v290_v51 = vld [vmem:[#allocation5 + $0x88] sm:$0xff] }
 0x2a4   : > { %v3764_v53 = vadd.f32 %v2718_v52, %v287_v50  ;;  %v976_v55 = vpop.f32.mrb[21].mxu1 }
 0x2a5   : > { %v3766_v56 = vpop.f32.mrb[22].mxu1  ;;  %v3790_v29 = vadd.f32 %v976_v55, %v285_v18  ;;  %v296_v55 = vld [vmem:[#allocation5 + $0xb8] sm:$0xff] }
 0x2a6   : > { %v3768_v16 = vpop.f32.mrb[23].mxu1  ;;  %v1244_v59 = vsel %vm1201_vm1, %v3764_v53, -inf }
 0x2a7   : > { %1245 = vmax.xlane.f32.xlu1 %v1244_v59  ;;  %v1238_v50 = vsel %vm1201_vm1, %v3790_v29, -inf }
 0x2af   : > { %v2730_v62 = vpop.f32.mrb[16].mxu0 }
 0x2b0   : > { %v3776_v2 = vadd.f32 %v2730_v62, %v291_v61  ;;  %v1049_v3 = vpop.f32.mrb[17].mxu0 }
 0x2b1   : > { %v2731_v4 = vpop.f32.mrb[18].mxu0  ;;  %v3778_v6 = vadd.f32 %v1049_v3, %v289_v63 }
 0x2b2   : > { %v1052_v7 = vpop.f32.mrb[19].mxu0  ;;  %v1256_v8 = vsel %vm1201_vm1, %v3776_v2, -inf  ;;  %v3794_v37 = vadd.f32 %v2731_v4, %v292_v21 }
 0x2b3   : > { %1257 = vmax.xlane.f32.xlu0 %v1256_v8  ;;  %v1250_v20 = vsel %vm1201_vm1, %v3778_v6, -inf  ;;  %v3818_v3 = vadd.f32 %v1052_v7, %v290_v51  ;;  %v294_v51 = vld [vmem:[#allocation5 + $0xa8] sm:$0xff] }
 0x2b4   : > { %v1259_v49 = vsel %vm1201_vm1, %v3794_v37, -inf }
 0x2b5   : > { %v1210_v11 = vpop.xlane.xlu0 %1209 }
 0x2b6   : > { %v1300_v32 = vsub.f32 %v3716_v54, %v1210_v11 }
 0x2b7   : > { %v2734_v22 = vpop.f32.mrb[20].mxu0  ;;  %1251 = vmax.xlane.f32.xlu0 %v1250_v20  ;;  %v288_v20 = vld [vmem:[#allocation5 + $0x78] sm:$0xff] }
 0x2b8   : > { %v3788_v23 = vadd.f32 %v2734_v22, %v295_v12  ;;  %v1065_v24 = vpop.f32.mrb[21].mxu0  ;;  %v1207_v28 = vpop.xlane.xlu1 %1206  ;;  %v1334_v47 = vmul.f32 1.442695, %v1300_v32  ;;  %v299_v22 = vld [vmem:[#allocation5 + $0xd0] sm:$0xff] }
 0x2b9   : > { %v1299_v33 = vsub.f32 %v3722_v5, %v1207_v28  ;;  %v2735_v34 = vpop.f32.mrb[22].mxu0  ;;  %v1204_v35 = vpop.xlane.xlu0 %1203  ;;  %v3809_v52 = vadd.f32 %v1065_v24, %v293_v43 }
 0x2ba   : > { %v1298_v38 = vsub.f32 %v3718_v0, %v1204_v35  ;;  %v3797_v40 = vpop.f32.mrb[23].mxu0  ;;  %v1268_v42 = vsel %vm1201_vm1, %v3788_v23, -inf  ;;  %v3820_v4 = vadd.f32 %v2735_v34, %v296_v55 }
 0x2bb   : > { %v1332_v44 = vmul.f32 1.442695, %v1299_v33  ;;  %1236 = vmax.xlane.f32.xlu0 %v1235_v41  ;;  %1269 = vmax.xlane.f32.xlu1 %v1268_v42  ;;  %v2746_v54 = vpop.f32.mrb[24].mxu1  ;;  %v1262_v18 = vsel %vm1201_vm1, %v3809_v52, -inf  ;;  %v286_v41 = vld [vmem:[#allocation5 + $0x68] sm:$0xff] }
 0x2bc   : > { %v1330_v5 = vmul.f32 1.442695, %v1298_v38  ;;  %v3803_v14 = vpop.f32.mrb[25].mxu1  ;;  %v1271_v36 = vsel %vm1201_vm1, %v3820_v4, -inf  ;;  %v3845_v42 = vadd.f32 %v2746_v54, %v299_v22  ;;  %v3132_v22 = vunpack.i.l.bf16 %v3774_v1 }
 0x2bd   : > { %3174 = vpow2.f32 %v1332_v44  ;;  %v1213_v0 = vpop.xlane.xlu0 %1212  ;;  %v1222_v15 = vpop.xlane.xlu1 %1221  ;;  %v297_v44 = vld [vmem:[#allocation5 + $0xc0] sm:$0xff] }
 0x2be   : > { %3176 = vpow2.f32 %v1330_v5  ;;  %v1301_v59 = vsub.f32 %v3726_v19, %v1213_v0  ;;  %v3812_v61 = vpop.f32.mrb[26].mxu1  ;;  %v1229_v19 = vsel %vm1201_vm1, %v3805_v46, -inf  ;;  %v1304_v7 = vsub.f32 %v3734_v27, %v1222_v15 }
 0x2bf   : > { %v3816_v62 = vpop.f32.mrb[27].mxu1  ;;  %1260 = vmax.xlane.f32.xlu0 %v1259_v49  ;;  %1239 = vmax.xlane.f32.xlu1 %v1238_v50  ;;  %3178 = vpow2.f32 %v1334_v47  ;;  %v1253_v27 = vsel %vm1201_vm1, %v3818_v3, -inf  ;;  %v3123_v5 = vunpack.i.h.bf16 %v3772_v60  ;;  %v3122_v47 = vunpack.i.l.bf16 %v3772_v60 }
 0x2c0   : > { %v1336_v63 = vmul.f32 1.442695, %v1301_v59  ;;  %v1342_v43 = vmul.f32 1.442695, %v1304_v7  ;;  %v3854_v15 = vadd.f32 %v3768_v16, %v286_v41  ;;  %v3861_v55 = vadd.f32 %v3803_v14, %v297_v44  ;;  %v300_v16 = vld [vmem:[#allocation5 + $0xd8] sm:$0xff] }
 0x2c1   : > { %v1216_v8 = vpop.xlane.xlu1 %1215  ;;  %v1225_v10 = vpop.xlane.xlu0 %1224  ;;  %v1280_v60 = vsel %vm1201_vm1, %v3845_v42, -inf  ;;  %v3128_v49 = vunpack.i.h.bf16 %v3732_v26  ;;  %v3133_v7 = vunpack.i.h.bf16 %v3774_v1 }
 0x2c2   : > { %3180 = vpow2.f32 %v1336_v63  ;;  %v1302_v11 = vsub.f32 %v3737_v30, %v1216_v8  ;;  %v1305_v12 = vsub.f32 %v3739_v31, %v1225_v10  ;;  %v3834_v30 = vadd.f32 %v3766_v56, %v288_v20 }
 0x2c3   : > { %1230 = vmax.xlane.f32.xlu0 %v1229_v19  ;;  %1263 = vmax.xlane.f32.xlu1 %v1262_v18  ;;  %v3829_v21 = vpop.f32.mrb[28].mxu1  ;;  %v3127_v63 = vunpack.i.l.bf16 %v3732_v26  ;;  %v806_v8 = vpack.c.bf16 %v3123_v5, %v3122_v47  ;;  %v3873_v10 = vadd.f32 %v3797_v40, %v294_v51  ;;  %v1241_v19 = vsel %vm1201_vm1, %v3854_v15, -inf  ;;  %v301_v18 = vld [vmem:[#allocation5 + $0xe0] sm:$0xff]  ;;  %v302_v5 = vld [vmem:[#allocation5 + $0xe8] sm:$0xff] }
 0x2c4   : > { %v1338_v24 = vmul.f32 1.442695, %v1302_v11  ;;  %v1154_v28 = vpop.f32.mrb[29].mxu1  ;;  %v1344_v32 = vmul.f32 1.442695, %v1305_v12  ;;  %v1247_v54 = vsel %vm1201_vm1, %v3834_v30, -inf  ;;  %v3878_v11 = vadd.f32 %v3812_v61, %v300_v16 }
 0x2c5   : > { %v1219_v33 = vpop.xlane.xlu0 %1218  ;;  %v3831_v34 = vpop.f32.mrb[30].mxu1  ;;  %v298_v12 = vld [vmem:[#allocation5 + $0xc8] sm:$0xff]  ;;  %v1274_v26 = vsel %vm1201_vm1, %v3861_v55, -inf  ;;  %v807_v20 = vpack.c.bf16 %v3128_v49, %v3127_v63 }
 0x2c6   : > { %v1303_v31 = vsub.f32 %v3745_v39, %v1219_v33  ;;  %v3837_v35 = vpop.f32.mrb[31].mxu1  ;;  %3182 = vpow2.f32 %v1338_v24  ;;  %v3887_v61 = vadd.f32 %v3816_v62, %v298_v12  ;;  %v1265_v24 = vsel %vm1201_vm1, %v3873_v10, -inf  ;;  %v303_v33 = vld [vmem:[#allocation5 + $0xf0] sm:$0xff] }
 0x2c7   : > { %v3843_v38 = vpop.eup %3174  ;;  %1254 = vmax.xlane.f32.xlu0 %v1253_v27  ;;  %1272 = vmax.xlane.f32.xlu1 %v1271_v36  ;;  %3184 = vpow2.f32 %v1344_v32  ;;  %v304_v36 = vld [vmem:[#allocation5 + $0xf8] sm:$0xff]  ;;  %v808_v62 = vpack.c.bf16 %v3133_v7, %v3132_v22 }
 0x2c8   : > { %v3847_v56 = vpop.eup %3176  ;;  %v1340_v39 = vmul.f32 1.442695, %v1303_v31  ;;  %v3891_v31 = vadd.f32 %v1154_v28, %v301_v18  ;;  %v1277_v44 = vsel %vm1201_vm1, %v3887_v61, -inf }
 0x2c9   : > { %v1618_v0 = vpack.c.bf16 %v3843_v38, %v3847_v56  ;;  %v3858_v50 = vpop.eup %3178  ;;  %v1394_v51 = vsel %vm1201_vm1, %v3847_v56, 0.0 }
 0x2ca   : > { %3186 = vpow2.f32 %v1340_v39  ;;  %v3901_v39 = vadd.f32 %v3831_v34, %v304_v36  ;;  %v1286_v47 = vsel %vm1201_vm1, %v3891_v31, -inf  ;;  %v1400_v16 = vsel %vm1201_vm1, %v3858_v50, 0.0 }
 0x2cb   : > { %3188 = vpow2.f32 %v1342_v43  ;;  %2760 = vmatprep.mubr.msk.bf16.mxu0 %vm1201_vm1, %v1618_v0  ;;  %1248 = vmax.xlane.f32.xlu0 %v1247_v54  ;;  %v3896_v43 = vadd.f32 %v3829_v21, %v303_v33  ;;  %v3908_v21 = vadd.f32 %v3837_v35, %v302_v5  ;;  %v1397_v35 = vsel %vm1201_vm1, %v3843_v38, 0.0 }
 0x2cc   : > { %v3866_v59 = vpop.eup %3180  ;;  %1281 = vmax.xlane.f32.xlu1 %v1280_v60  ;;  %v1295_v34 = vsel %vm1201_vm1, %v3901_v39, -inf }
 0x2cd   : > { %v1619_v14 = vpack.c.bf16 %v3866_v59, %v3858_v50  ;;  %v1292_v0 = vsel %vm1201_vm1, %v3896_v43, -inf  ;;  %v1289_v54 = vsel %vm1201_vm1, %v3908_v21, -inf }
 0x2cf   : > { %2761 = vmatmul.mubr.msk.bf16.vlgmr.msra.gmra.mrb[24].mxu0 %vm1201_vm1, %v1619_v14  ;;  %1242 = vmax.xlane.f32.xlu0 %v1241_v19 }
 0x2d0   : > { %1275 = vmax.xlane.f32.xlu1 %v1274_v26  ;;  %2785 = vmatpush3.bf16.msra.mxu0 %v3730_v25  ;;  %v3183_v40 = vpop.eup %3182  ;;  %v1283_v25 = vsel %vm1201_vm1, %v3878_v11, -inf }
 0x2d1   : > { %2786 = vmatprep.subr.bf16.mxu0 %v806_v8  ;;  %v3185_v32 = vpop.eup %3184  ;;  %v1406_v60 = vsel %vm1201_vm1, %v3183_v40, 0.0 }
 0x2d2   : > { %v1415_v38 = vsel %vm1201_vm1, %v3185_v32, 0.0 }
 0x2d3   : > { %1266 = vmax.xlane.f32.xlu0 %v1265_v24 }
 0x2d4   : > { %v3187_v27 = vpop.eup %3186  ;;  %1284 = vmax.xlane.f32.xlu1 %v1283_v25  ;;  %2787 = vmatpush3.bf16.msra.mxu0 %v806_v8 }
 0x2d5   : > { %v3189_v41 = vpop.eup %3188  ;;  %v1620_v1 = vpack.c.bf16 %v3187_v27, %v3183_v40  ;;  %2788 = vmatprep.subr.bf16.mxu0 %v807_v20 }
 0x2d6   : > { %v1621_v28 = vpack.c.bf16 %v3185_v32, %v3189_v41  ;;  %v1412_v49 = vsel %vm1201_vm1, %v3189_v41, 0.0 }
 0x2d7   : > { %2764 = vmatprep.mubr.msk.bf16.mxu0 %vm1201_vm1, %v1620_v1  ;;  %1278 = vmax.xlane.f32.xlu0 %v1277_v44 }
 0x2d8   : > { %1287 = vmax.xlane.f32.xlu1 %v1286_v47  ;;  %2765 = vmatmul.mubr.msk.bf16.gmra.mrb[28].mxu0 %vm1201_vm1, %v1621_v28 }
 0x2d9   : > { %2789 = vmatpush3.bf16.msra.mxu0 %v807_v20 }
 0x2da   : > { %2790 = vmatprep.subr.bf16.mxu0 %v808_v62 }
 0x2db   : > { %1293 = vmax.xlane.f32.xlu0 %v1292_v0 }
 0x2dc   : > { %1296 = vmax.xlane.f32.xlu1 %v1295_v34 }
 0x2dd   : > { %2791 = vmatpush3.bf16.msra.mxu0 %v808_v62 }
 0x2df   : > { %1290 = vmax.xlane.f32.xlu0 %v1289_v54 }
 0x2ed   : > { %3150 = vrot.lane.b32.xlu1 %v3647_v57, %s3439_s14  ;;  %v1403_v57 = vsel %vm1201_vm1, %v3866_v59, 0.0  ;;  %v3937_v59 = vld [vmem:[%s4230_s3] sm:$0xff]  }
 0x2ee   : > { %2816 = vmatprep.subr.bf16.mxu0 %v3937_v59 }
 0x2f5   : > { %3145 = vrot.lane.b32.xlu0 %v3649_v58, %s3439_s14  ;;  %v1409_v58 = vsel %vm1201_vm1, %v3187_v27, 0.0 }
 0x311   : > { %1398 = vadd.xlane.f32.xlu1 %v1397_v35 }
 0x314   : > { %1395 = vadd.xlane.f32.xlu0 %v1394_v51 }
 0x315   : > { %1407 = vadd.xlane.f32.xlu1 %v1406_v60 }
 0x318   : > { %1401 = vadd.xlane.f32.xlu0 %v1400_v16 }
 0x319   : > { %1413 = vadd.xlane.f32.xlu1 %v1412_v49 }
 0x31c   : > { %1404 = vadd.xlane.f32.xlu0 %v1403_v57 }
 0x320   : > { %1410 = vadd.xlane.f32.xlu0 %v1409_v58 }
 0x324   : > { %1416 = vadd.xlane.f32.xlu0 %v1415_v38 }
 0x32c   : > { %v1234_v56 = vpop.xlane.xlu1 %1233 }
 0x32d   : > { %v1308_v63 = vsub.f32 %v3756_v45, %v1234_v56 }
 0x32f   : > { %v1350_v14 = vmul.f32 1.442695, %v1308_v63 }
 0x330   : > { %v1228_v8 = vpop.xlane.xlu1 %1227 }
 0x331   : > { %v1306_v50 = vsub.f32 %v3758_v48, %v1228_v8 }
 0x333   : > { %v1346_v19 = vmul.f32 1.442695, %v1306_v50 }
 0x334   : > { %v1246_v48 = vpop.xlane.xlu1 %1245 }
 0x335   : > { %3190 = vpow2.f32 %v1346_v19  ;;  %v1312_v24 = vsub.f32 %v3764_v53, %v1246_v48  ;;  %v3142_v19 = vunpack.i.l.bf16 %v3782_v9 }
 0x336   : > { %3192 = vpow2.f32 %v1350_v14 }
 0x337   : > { %v1358_v36 = vmul.f32 1.442695, %v1312_v24 }
 0x33f   : > { %v3940_v12 = vpop.eup %3190 }
 0x340   : > { %v1258_v26 = vpop.xlane.xlu0 %1257  ;;  %v1418_v45 = vsel %vm1201_vm1, %v3940_v12, 0.0  ;;  %v3944_v18 = vpop.eup %3192 }
 0x341   : > { %1419 = vadd.xlane.f32.xlu1 %v1418_v45  ;;  %v1424_v40 = vsel %vm1201_vm1, %v3944_v18, 0.0  ;;  %v1316_v0 = vsub.f32 %v3776_v2, %v1258_v26 }
 0x343   : > { %v1366_v35 = vmul.f32 1.442695, %v1316_v0 }
 0x344   : > { %v1252_v20 = vpop.xlane.xlu0 %1251 }
 0x345   : > { %1425 = vadd.xlane.f32.xlu1 %v1424_v40  ;;  %v1314_v41 = vsub.f32 %v3778_v6, %v1252_v20 }
 0x347   : > { %v1362_v53 = vmul.f32 1.442695, %v1314_v41 }
 0x348   : > { %v1237_v7 = vpop.xlane.xlu0 %1236  ;;  %v1270_v22 = vpop.xlane.xlu1 %1269 }
 0x349   : > { %v1309_v32 = vsub.f32 %v3784_v17, %v1237_v7 }
 0x34b   : > { %v1352_v62 = vmul.f32 1.442695, %v1309_v32 }
 0x34c   : > { %v1261_v33 = vpop.xlane.xlu0 %1260  ;;  %v1240_v25 = vpop.xlane.xlu1 %1239 }
 0x34d   : > { %v1310_v27 = vsub.f32 %v3790_v29, %v1240_v25  ;;  %v1317_v44 = vsub.f32 %v3794_v37, %v1261_v33  ;;  %v1320_v37 = vsub.f32 %v3788_v23, %v1270_v22 }
 0x34f   : > { %v1354_v1 = vmul.f32 1.442695, %v1310_v27  ;;  %v1368_v34 = vmul.f32 1.442695, %v1317_v44  ;;  %v1374_v49 = vmul.f32 1.442695, %v1320_v37 }
 0x350   : > { %v1231_v28 = vpop.xlane.xlu0 %1230  ;;  %v1264_v5 = vpop.xlane.xlu1 %1263 }
 0x351   : > { %v1307_v47 = vsub.f32 %v3805_v46, %v1231_v28  ;;  %3194 = vpow2.f32 %v1354_v1  ;;  %v1318_v51 = vsub.f32 %v3809_v52, %v1264_v5  ;;  %v3167_v28 = vld [vmem:[%s4230_s3 + $0x8] sm:$0xff]  }
 0x352   : > { %3196 = vpow2.f32 %v1358_v36 }
 0x353   : > { %v1348_v17 = vmul.f32 1.442695, %v1307_v47  ;;  %3198 = vpow2.f32 %v1352_v62  ;;  %v1370_v58 = vmul.f32 1.442695, %v1318_v51 }
 0x354   : > { %v1255_v29 = vpop.xlane.xlu0 %1254  ;;  %v1273_v54 = vpop.xlane.xlu1 %1272 }
 0x355   : > { %3200 = vpow2.f32 %v1348_v17  ;;  %v1315_v6 = vsub.f32 %v3818_v3, %v1255_v29  ;;  %v1321_v57 = vsub.f32 %v3820_v4, %v1273_v54  ;;  %v3143_v4 = vunpack.i.h.bf16 %v3782_v9 }
 0x356   : > { %3202 = vpow2.f32 %v1362_v53 }
 0x357   : > { %v1364_v46 = vmul.f32 1.442695, %v1315_v6  ;;  %3204 = vpow2.f32 %v1368_v34 }
 0x358   : > { %v1249_v2 = vpop.xlane.xlu0 %1248 }
 0x359   : > { %3206 = vpow2.f32 %v1364_v46  ;;  %v1313_v60 = vsub.f32 %v3834_v30, %v1249_v2  ;;  %v1282_v16 = vpop.xlane.xlu1 %1281  ;;  %v1376_v30 = vmul.f32 1.442695, %v1321_v57 }
 0x35a   : > { %3208 = vpow2.f32 %v1366_v35  ;;  %v1324_v33 = vsub.f32 %v3845_v42, %v1282_v16 }
 0x35b   : > { %v3960_v38 = vpop.eup %3194  ;;  %v1360_v3 = vmul.f32 1.442695, %v1313_v60  ;;  %3210 = vpow2.f32 %v1374_v49 }
 0x35c   : > { %v1243_v56 = vpop.xlane.xlu0 %1242  ;;  %v3962_v23 = vpop.eup %3196  ;;  %v1430_v8 = vsel %vm1201_vm1, %v3960_v38, 0.0  ;;  %3212 = vpow2.f32 %v1370_v58  ;;  %v1382_v5 = vmul.f32 1.442695, %v1324_v33 }
 0x35d   : > { %v1311_v52 = vsub.f32 %v3854_v15, %v1243_v56  ;;  %v1276_v63 = vpop.xlane.xlu1 %1275  ;;  %v3199_v50 = vpop.eup %3198  ;;  %1431 = vadd.xlane.f32.xlu1 %v1430_v8  ;;  %3214 = vpow2.f32 %v1360_v3  ;;  %v1436_v9 = vsel %vm1201_vm1, %v3962_v23, 0.0 }
 0x35e   : > { %v1322_v45 = vsub.f32 %v3861_v55, %v1276_v63  ;;  %v1623_v7 = vpack.c.bf16 %v3199_v50, %v3944_v18  ;;  %v1427_v36 = vsel %vm1201_vm1, %v3199_v50, 0.0 }
 0x35f   : > { %v3201_v14 = vpop.eup %3200  ;;  %v1356_v26 = vmul.f32 1.442695, %v1311_v52 }
 0x360   : > { %v1267_v48 = vpop.xlane.xlu0 %1266  ;;  %v1421_v15 = vsel %vm1201_vm1, %v3201_v14, 0.0  ;;  %v1622_v20 = vpack.c.bf16 %v3201_v14, %v3940_v12  ;;  %v3203_v40 = vpop.eup %3202  ;;  %v810_v12 = vpack.c.bf16 %v3143_v4, %v3142_v19  ;;  %v1378_v25 = vmul.f32 1.442695, %v1322_v45 }
 0x361   : > { %3216 = vpow2.f32 %v1356_v26  ;;  %v1319_v22 = vsub.f32 %v3873_v10, %v1267_v48  ;;  %v1285_v24 = vpop.xlane.xlu1 %1284  ;;  %1422 = vadd.xlane.f32.xlu0 %v1421_v15  ;;  %v3976_v32 = vpop.eup %3204  ;;  %1437 = vadd.xlane.f32.xlu1 %v1436_v9  ;;  %v1442_v42 = vsel %vm1201_vm1, %v3203_v40, 0.0 }
 0x362   : > { %3218 = vpow2.f32 %v1376_v30  ;;  %2776 = vmatprep.mubr.msk.bf16.mxu1 %vm1201_vm1, %v1622_v20 }
 0x363   : > { %v3979_v55 = vpop.eup %3206  ;;  %v1372_v18 = vmul.f32 1.442695, %v1319_v22  ;;  %2777 = vmatmul.mubr.msk.bf16.vlgmr.msra.gmra.mrb[32].mxu1 %vm1201_vm1, %v1623_v7  ;;  %v1451_v7 = vsel %vm1201_vm1, %v3976_v32, 0.0 }
 0x364   : > { %v3209_v10 = vpop.eup %3208  ;;  %2801 = vmatpush3.bf16.msra.mxu1 %v3751_v13  ;;  %v1279_v27 = vpop.xlane.xlu0 %1278  ;;  %v1626_v41 = vpack.c.bf16 %v3979_v55, %v3203_v40  ;;  %v1325_v13 = vsub.f32 %v3878_v11, %v1285_v24  ;;  %v1445_v26 = vsel %vm1201_vm1, %v3979_v55, 0.0 }
 0x365   : > { %v1627_v1 = vpack.c.bf16 %v3976_v32, %v3209_v10  ;;  %3220 = vpow2.f32 %v1372_v18  ;;  %2802 = vmatprep.subr.bf16.mxu1 %v810_v12  ;;  %v1323_v62 = vsub.f32 %v3887_v61, %v1279_v27  ;;  %v1288_v44 = vpop.xlane.xlu1 %1287  ;;  %1428 = vadd.xlane.f32.xlu0 %v1427_v36  ;;  %v3211_v0 = vpop.eup %3210  ;;  %v1448_v11 = vsel %vm1201_vm1, %v3209_v10, 0.0 }
 0x366   : > { %1443 = vadd.xlane.f32.xlu1 %v1442_v42  ;;  %2792 = vmatprep.mubr.msk.bf16.mxu0 %vm1201_vm1, %v1626_v41  ;;  %3222 = vpow2.f32 %v1378_v25  ;;  %v1326_v61 = vsub.f32 %v3891_v31, %v1288_v44  ;;  %v3213_v17 = vpop.eup %3212  ;;  %v1384_v54 = vmul.f32 1.442695, %v1325_v13 }
 0x367   : > { %v1380_v47 = vmul.f32 1.442695, %v1323_v62  ;;  %2793 = vmatmul.mubr.msk.bf16.vlgmr.msra.gmra.mrb[32].mxu0 %vm1201_vm1, %v1627_v1  ;;  %v3215_v29 = vpop.eup %3214  ;;  %v1454_v16 = vsel %vm1201_vm1, %v3213_v17, 0.0 }
 0x368   : > { %2803 = vmatpush3.bf16.msra.mxu1 %v810_v12  ;;  %v1294_v53 = vpop.xlane.xlu0 %1293  ;;  %2817 = vmatpush3.bf16.msra.mxu0 %v3937_v59  ;;  %v1386_v37 = vmul.f32 1.442695, %v1326_v61  ;;  %v1625_v49 = vpack.c.bf16 %v3215_v29, %v3962_v23  ;;  %v1439_v3 = vsel %vm1201_vm1, %v3215_v29, 0.0 }
 0x369   : > { %3224 = vpow2.f32 %v1380_v47  ;;  %v1297_v34 = vpop.xlane.xlu1 %1296  ;;  %2818 = vmatprep.subr.bf16.mxu0 %v3167_v28  ;;  %v1328_v31 = vsub.f32 %v3896_v43, %v1294_v53 }
 0x36a   : > { %1449 = vadd.xlane.f32.xlu1 %v1448_v11  ;;  %3226 = vpow2.f32 %v1382_v5  ;;  %v1329_v57 = vsub.f32 %v3901_v39, %v1297_v34 }
 0x36b   : > { %v3217_v6 = vpop.eup %3216  ;;  %3228 = vpow2.f32 %v1384_v54  ;;  %v1390_v56 = vmul.f32 1.442695, %v1328_v31  ;;  %v3168_v31 = vld [vmem:[%s4230_s3 + $0x10] sm:$0xff]  }
 0x36c   : > { %v3998_v35 = vpop.eup %3218  ;;  %v1291_v51 = vpop.xlane.xlu0 %1290  ;;  %v1433_v46 = vsel %vm1201_vm1, %v3217_v6, 0.0  ;;  %v1624_v59 = vpack.c.bf16 %v3217_v6, %v3960_v38  ;;  %2819 = vmatpush3.bf16.msra.mxu0 %v3167_v28  ;;  %v1460_v38 = vsel %vm1201_vm1, %v3211_v0, 0.0  ;;  %3230 = vpow2.f32 %v1386_v37 }
 0x36d   : > { %v3151_v2 = vpop.permute.xlu1 %3150  ;;  %v1327_v60 = vsub.f32 %v3908_v21, %v1291_v51  ;;  %1434 = vadd.xlane.f32.xlu0 %v1433_v46  ;;  %v1629_v21 = vpack.c.bf16 %v3998_v35, %v3211_v0  ;;  %v1392_v14 = vmul.f32 1.442695, %v1329_v57  ;;  %v1463_v25 = vsel %vm1201_vm1, %v3998_v35, 0.0  ;;  %2828 = vmatprep.subr.bf16.mxu0 %v3168_v31 }
 0x36e   : > { %1455 = vadd.xlane.f32.xlu1 %v1454_v16  ;;  %2780 = vmatprep.mubr.msk.bf16.mxu1 %vm1201_vm1, %v1624_v59  ;;  %v3153_v52 = vunpack.i.h.bf16 %v3151_v2  ;;  %v3152_v8 = vunpack.i.l.bf16 %v3151_v2 }
 0x36f   : > { %v3221_v43 = vpop.eup %3220  ;;  %v1388_v58 = vmul.f32 1.442695, %v1327_v60  ;;  %2781 = vmatmul.mubr.msk.bf16.gmra.mrb[36].mxu1 %vm1201_vm1, %v1625_v49 }
 0x370   : > { %v3146_v23 = vpop.permute.xlu0 %3145  ;;  %v1628_v63 = vpack.c.bf16 %v3221_v43, %v3213_v17  ;;  %v3223_v30 = vpop.eup %3222  ;;  %v812_v15 = vpack.c.bf16 %v3153_v52, %v3152_v8  ;;  %v1457_v12 = vsel %vm1201_vm1, %v3221_v43, 0.0 }
 0x371   : > { %3232 = vpow2.f32 %v1388_v58  ;;  %v3148_v39 = vunpack.i.h.bf16 %v3146_v23  ;;  %v3147_v50 = vunpack.i.l.bf16 %v3146_v23  ;;  %1440 = vadd.xlane.f32.xlu0 %v1439_v3  ;;  %v1466_v20 = vsel %vm1201_vm1, %v3223_v30, 0.0 }
 0x372   : > { %1461 = vadd.xlane.f32.xlu1 %v1460_v38  ;;  %2796 = vmatprep.mubr.msk.bf16.mxu0 %vm1201_vm1, %v1628_v63  ;;  %3234 = vpow2.f32 %v1390_v56 }
 0x373   : > { %v3225_v4 = vpop.eup %3224  ;;  %v811_v19 = vpack.c.bf16 %v3148_v39, %v3147_v50  ;;  %2797 = vmatmul.mubr.msk.bf16.gmra.mrb[36].mxu0 %vm1201_vm1, %v1629_v21  ;;  %3236 = vpow2.f32 %v1392_v14 }
 0x374   : > { %v1630_v45 = vpack.c.bf16 %v3225_v4, %v3223_v30  ;;  %v3227_v48 = vpop.eup %3226  ;;  %v1469_v41 = vsel %vm1201_vm1, %v3225_v4, 0.0 }
 0x375   : > { %1446 = vadd.xlane.f32.xlu0 %v1445_v26  ;;  %2804 = vmatprep.subr.bf16.mxu1 %v811_v19  ;;  %v3229_v40 = vpop.eup %3228  ;;  %v1472_v22 = vsel %vm1201_vm1, %v3227_v48, 0.0 }
 0x376   : > { %1467 = vadd.xlane.f32.xlu1 %v1466_v20  ;;  %2805 = vmatpush3.bf16.msra.mxu1 %v811_v19  ;;  %v3231_v24 = vpop.eup %3230  ;;  %v1631_v55 = vpack.c.bf16 %v3229_v40, %v3227_v48  ;;  %v1475_v1 = vsel %vm1201_vm1, %v3229_v40, 0.0 }
 0x377   : > { %2808 = vmatprep.mubr.msk.bf16.mxu1 %vm1201_vm1, %v1630_v45  ;;  %2806 = vmatprep.subr.bf16.mxu1 %v812_v15  ;;  %v1478_v18 = vsel %vm1201_vm1, %v3231_v24, 0.0 }
 0x379   : > { %1452 = vadd.xlane.f32.xlu0 %v1451_v7 }
 0x37a   : > { %1473 = vadd.xlane.f32.xlu1 %v1472_v22  ;;  %2807 = vmatpush3.bf16.msra.mxu1 %v812_v15 }
 0x37b   : > { %v3233_v9 = vpop.eup %3232 }
 0x37c   : > { %v1632_v33 = vpack.c.bf16 %v3233_v9, %v3231_v24  ;;  %v3235_v10 = vpop.eup %3234  ;;  %v1481_v62 = vsel %vm1201_vm1, %v3233_v9, 0.0 }
 0x37d   : > { %1458 = vadd.xlane.f32.xlu0 %v1457_v12  ;;  %2809 = vmatmul.mubr.msk.bf16.vlgmr.msra.gmra.mrb[40].mxu1 %vm1201_vm1, %v1631_v55  ;;  %v3237_v32 = vpop.eup %3236  ;;  %v1484_v27 = vsel %vm1201_vm1, %v3235_v10, 0.0  ;;  %v3169_v12 = vld [vmem:[%s4230_s3 + $0x18] sm:$0xff]  }
 0x37e   : > { %1479 = vadd.xlane.f32.xlu1 %v1478_v18  ;;  %2812 = vmatprep.mubr.msk.bf16.mxu1 %vm1201_vm1, %v1632_v33  ;;  %v1633_v36 = vpack.c.bf16 %v3237_v32, %v3235_v10  ;;  %v1487_v44 = vsel %vm1201_vm1, %v3237_v32, 0.0 }
 0x381   : > { %1464 = vadd.xlane.f32.xlu0 %v1463_v25 }
 0x382   : > { %1485 = vadd.xlane.f32.xlu1 %v1484_v27 }
 0x385   : > { %1470 = vadd.xlane.f32.xlu0 %v1469_v41  ;;  %2813 = vmatmul.mubr.msk.bf16.gmra.mrb[44].mxu1 %vm1201_vm1, %v1633_v36 }
 0x389   : > { %1476 = vadd.xlane.f32.xlu0 %v1475_v1  ;;  %v4045_v1 = vld [vmem:[%s4230_s3 + $0x20] sm:$0xff]  }
 0x38d   : > { %1482 = vadd.xlane.f32.xlu0 %v1481_v62 }
 0x391   : > { %1488 = vadd.xlane.f32.xlu0 %v1487_v44 }
 0x39e   : > { %v1399_v42 = vpop.xlane.xlu1 %1398 }
 0x39f   : > { %3238 = vrcp.f32 %v1399_v42 }
 0x3a1   : > { %v1396_v28 = vpop.xlane.xlu0 %1395 }
 0x3a2   : > { %v1408_v13 = vpop.xlane.xlu1 %1407  ;;  %3240 = vrcp.f32 %v1396_v28  ;;  %v2762_v5 = vpop.f32.mrb[24].mxu0 }
 0x3a3   : > { %v1680_v47 = vpop.f32.mrb[25].mxu0  ;;  %3242 = vrcp.f32 %v1408_v13 }
 0x3a4   : > { %v2763_v0 = vpop.f32.mrb[26].mxu0 }
 0x3a5   : > { %v1683_v61 = vpop.f32.mrb[27].mxu0  ;;  %v1402_v53 = vpop.xlane.xlu0 %1401 }
 0x3a6   : > { %v1414_v17 = vpop.xlane.xlu1 %1413  ;;  %3244 = vrcp.f32 %v1402_v53 }
 0x3a7   : > { %3246 = vrcp.f32 %v1414_v17 }
 0x3a9   : > { %v3239_v34 = vpop.eup %3238  ;;  %v1405_v11 = vpop.xlane.xlu0 %1404 }
 0x3aa   : > { %v1523_v29 = vmul.f32 %v3239_v34, %v1399_v42  ;;  %3248 = vrcp.f32 %v1405_v11 }
 0x3ab   : > { %v2766_v54 = vpop.f32.mrb[28].mxu0 }
 0x3ac   : > { %v3241_v6 = vpop.eup %3240  ;;  %v1555_v35 = vsub.f32 2.0, %v1523_v29  ;;  %v1696_v37 = vpop.f32.mrb[29].mxu0 }
 0x3ad   : > { %v1522_v51 = vmul.f32 %v3241_v6, %v1396_v28  ;;  %v2767_v46 = vpop.f32.mrb[30].mxu0  ;;  %v1411_v59 = vpop.xlane.xlu0 %1410 }
 0x3ae   : > { %3250 = vrcp.f32 %v1411_v59  ;;  %v1699_v2 = vpop.f32.mrb[31].mxu0  ;;  %v3243_v60 = vpop.eup %3242  ;;  %v1587_v49 = vmul.f32 %v3239_v34, %v1555_v35 }
 0x3af   : > { %v1554_v16 = vsub.f32 2.0, %v1522_v51  ;;  %v1526_v3 = vmul.f32 %v3243_v60, %v1408_v13 }
 0x3b0   : > { %v3245_v57 = vpop.eup %3244  ;;  %v1943_v52 = vmul.f32 %v1683_v61, %v1587_v49 }
 0x3b1   : > { %v1586_v43 = vmul.f32 %v3241_v6, %v1554_v16  ;;  %v1524_v58 = vmul.f32 %v3245_v57, %v1402_v53  ;;  %v1417_v38 = vpop.xlane.xlu0 %1416  ;;  %v3247_v21 = vpop.eup %3246  ;;  %v1558_v50 = vsub.f32 2.0, %v1526_v3 }
 0x3b2   : > { %3252 = vrcp.f32 %v1417_v38  ;;  %v1528_v30 = vmul.f32 %v3247_v21, %v1414_v17 }
 0x3b3   : > { %v1942_v56 = vmul.f32 %v1680_v47, %v1586_v43  ;;  %v1556_v23 = vsub.f32 2.0, %v1524_v58  ;;  %v1590_v48 = vmul.f32 %v3243_v60, %v1558_v50 }
 0x3b4   : > { %v3249_v63 = vpop.eup %3248  ;;  %v1560_v15 = vsub.f32 2.0, %v1528_v30 }
 0x3b5   : > { %v1974_v8 = vpack.c.bf16 %v1943_v52, %v1942_v56  ;;  %v1525_v39 = vmul.f32 %v3249_v63, %v1405_v11  ;;  %v1588_v14 = vmul.f32 %v3245_v57, %v1556_v23  ;;  %v1946_v18 = vmul.f32 %v1696_v37, %v1590_v48 }
 0x3b6   : > { %v1592_v33 = vmul.f32 %v3247_v21, %v1560_v15 }
 0x3b7   : > { %v1557_v4 = vsub.f32 2.0, %v1525_v39  ;;  %2820 = vmatprep.mubr.msk.bf16.mxu0 %vm374_vm0, %v1974_v8  ;;  %v1944_v20 = vmul.f32 %v2762_v5, %v1588_v14 }
 0x3b8   : > { %v3251_v19 = vpop.eup %3250  ;;  %v1948_v36 = vmul.f32 %v2766_v54, %v1592_v33 }
 0x3b9   : > { %v1589_v26 = vmul.f32 %v3249_v63, %v1557_v4  ;;  %v1527_v45 = vmul.f32 %v3251_v19, %v1411_v59 }
 0x3bb   : > { %v1945_v40 = vmul.f32 %v2763_v0, %v1589_v26  ;;  %v1559_v7 = vsub.f32 2.0, %v1527_v45 }
 0x3bc   : > { %v3253_v22 = vpop.eup %3252 }
 0x3bd   : > { %v1975_v24 = vpack.c.bf16 %v1945_v40, %v1944_v20  ;;  %v1591_v9 = vmul.f32 %v3251_v19, %v1559_v7  ;;  %v1529_v55 = vmul.f32 %v3253_v22, %v1417_v38 }
 0x3bf   : > { %v1947_v10 = vmul.f32 %v1699_v2, %v1591_v9  ;;  %v1561_v32 = vsub.f32 2.0, %v1529_v55  ;;  %2821 = vmatmul.mubr.msk.bf16.vlgmr.msra.gmra.mrb[40].mxu0 %vm374_vm0, %v1975_v24 }
 0x3c0   : > { %2829 = vmatpush3.bf16.msra.mxu0 %v3168_v31 }
 0x3c1   : > { %v1976_v25 = vpack.c.bf16 %v1947_v10, %v1946_v18  ;;  %v1593_v27 = vmul.f32 %v3253_v22, %v1561_v32  ;;  %2830 = vmatprep.subr.bf16.mxu0 %v3169_v12 }
 0x3c3   : > { %v1949_v41 = vmul.f32 %v2767_v46, %v1593_v27  ;;  %2824 = vmatprep.mubr.msk.bf16.mxu0 %vm374_vm0, %v1976_v25 }
 0x3c4   : > { %2831 = vmatpush3.bf16.msra.mxu0 %v3169_v12 }
 0x3c5   : > { %v1977_v62 = vpack.c.bf16 %v1949_v41, %v1948_v36  ;;  %2840 = vmatprep.subr.bf16.mxu0 %v4045_v1 }
 0x3c7   : > { %2825 = vmatmul.mubr.msk.bf16.gmra.mrb[44].mxu0 %vm374_vm0, %v1977_v62 }
 0x3ce   : > { %v1420_v44 = vpop.xlane.xlu1 %1419 }
 0x3cf   : > { %3254 = vrcp.f32 %v1420_v44 }
 0x3d2   : > { %v1426_v28 = vpop.xlane.xlu1 %1425 }
 0x3d3   : > { %3256 = vrcp.f32 %v1426_v28 }
 0x3d9   : > { %v3255_v37 = vpop.eup %3254 }
 0x3da   : > { %v1530_v58 = vmul.f32 %v3255_v37, %v1420_v44 }
 0x3dc   : > { %v1562_v8 = vsub.f32 2.0, %v1530_v58 }
 0x3dd   : > { %v3257_v31 = vpop.eup %3256 }
 0x3de   : > { %v1532_v16 = vmul.f32 %v3257_v31, %v1426_v28  ;;  %v1594_v55 = vmul.f32 %v3255_v37, %v1562_v8 }
 0x3e0   : > { %v1564_v52 = vsub.f32 2.0, %v1532_v16 }
 0x3e2   : > { %v1596_v20 = vmul.f32 %v3257_v31, %v1564_v52 }
 0x3ea   : > { %v1432_v5 = vpop.xlane.xlu1 %1431 }
 0x3ee   : > { %v1423_v42 = vpop.xlane.xlu0 %1422  ;;  %v4051_v0 = vpop.xlane.xlu1 %1437 }
 0x3f2   : > { %v1429_v13 = vpop.xlane.xlu0 %1428 }
 0x3f3   : > { %v1444_v53 = vpop.xlane.xlu1 %1443  ;;  %3258 = vrcp.f32 %v1429_v13 }
 0x3f4   : > { %3260 = vrcp.f32 %v1423_v42 }
 0x3f5   : > { %3262 = vrcp.f32 %v1444_v53 }
 0x3f7   : > { %v1450_v34 = vpop.xlane.xlu1 %1449 }
 0x3f8   : > { %3264 = vrcp.f32 %v1450_v34 }
 0x3fa   : > { %v4049_v47 = vpop.xlane.xlu0 %1434 }
 0x3fb   : > { %v4055_v29 = vpop.xlane.xlu1 %1455 }
 0x3fd   : > { %v3259_v51 = vpop.eup %3258 }
 0x3fe   : > { %v4053_v61 = vpop.xlane.xlu0 %1440  ;;  %v3261_v46 = vpop.eup %3260  ;;  %v1533_v49 = vmul.f32 %v3259_v51, %v1429_v13 }
 0x3ff   : > { %v4059_v6 = vpop.xlane.xlu1 %1461  ;;  %v3263_v59 = vpop.eup %3262  ;;  %v1531_v38 = vmul.f32 %v3261_v46, %v1423_v42 }
 0x400   : > { %v1538_v21 = vmul.f32 %v3263_v59, %v1444_v53  ;;  %v1565_v23 = vsub.f32 2.0, %v1533_v49 }
 0x401   : > { %v1563_v39 = vsub.f32 2.0, %v1531_v38 }
 0x402   : > { %v1447_v17 = vpop.xlane.xlu0 %1446  ;;  %v3265_v60 = vpop.eup %3264  ;;  %v1570_v4 = vsub.f32 2.0, %v1538_v21  ;;  %v1597_v7 = vmul.f32 %v3259_v51, %v1565_v23 }
 0x403   : > { %v4065_v2 = vpop.xlane.xlu1 %1467  ;;  %v1540_v56 = vmul.f32 %v3265_v60, %v1450_v34  ;;  %v1595_v33 = vmul.f32 %v3261_v46, %v1563_v39 }
 0x404   : > { %v1602_v36 = vmul.f32 %v3263_v59, %v1570_v4 }
 0x405   : > { %v1572_v45 = vsub.f32 2.0, %v1540_v56 }
 0x406   : > { %v1453_v11 = vpop.xlane.xlu0 %1452 }
 0x407   : > { %3266 = vrcp.f32 %v1453_v11  ;;  %v4074_v30 = vpop.xlane.xlu1 %1473  ;;  %v1604_v28 = vmul.f32 %v3265_v60, %v1572_v45 }
 0x408   : > { %3268 = vrcp.f32 %v1447_v17 }
 0x409   : > { %3270 = vrcp.f32 %v1432_v5 }
 0x40a   : > { %v4057_v54 = vpop.xlane.xlu0 %1458  ;;  %3272 = vrcp.f32 %v4051_v0 }
 0x40b   : > { %3274 = vrcp.f32 %v4053_v61  ;;  %v4092_v62 = vpop.xlane.xlu1 %1479 }
 0x40c   : > { %3276 = vrcp.f32 %v4049_v47 }
 0x40d   : > { %3278 = vrcp.f32 %v4055_v29 }
 0x40e   : > { %v4061_v35 = vpop.xlane.xlu0 %1464  ;;  %3280 = vrcp.f32 %v4059_v6 }
 0x40f   : > { %3282 = vrcp.f32 %v4061_v35 }
 0x410   : > { %3284 = vrcp.f32 %v4057_v54 }
 0x411   : > { %v3267_v43 = vpop.eup %3266  ;;  %3286 = vrcp.f32 %v4065_v2 }
 0x412   : > { %v4068_v57 = vpop.xlane.xlu0 %1470  ;;  %v3269_v3 = vpop.eup %3268  ;;  %v1541_v63 = vmul.f32 %v3267_v43, %v1453_v11  ;;  %3288 = vrcp.f32 %v4074_v30 }
 0x413   : > { %v1539_v50 = vmul.f32 %v3269_v3, %v1447_v17  ;;  %v4076_v14 = vpop.eup %3270 }
 0x414   : > { %v4080_v26 = vpop.eup %3272  ;;  %v1573_v15 = vsub.f32 2.0, %v1541_v63  ;;  %v1534_v24 = vmul.f32 %v4076_v14, %v1432_v5 }
 0x415   : > { %v4082_v22 = vpop.eup %3274  ;;  %v1571_v9 = vsub.f32 2.0, %v1539_v50  ;;  %v1536_v10 = vmul.f32 %v4080_v26, %v4051_v0  ;;  %v4126_v50 = vpop.xlane.xlu1 %1485 }
 0x416   : > { %v4078_v19 = vpop.xlane.xlu0 %1476  ;;  %v4085_v18 = vpop.eup %3276  ;;  %v1537_v53 = vmul.f32 %v4082_v22, %v4053_v61  ;;  %v1605_v11 = vmul.f32 %v3267_v43, %v1573_v15  ;;  %v3171_v43 = vld [vmem:[%s4230_s3 + $0x28] sm:$0xff]   ;;  %v1566_v58 = vsub.f32 2.0, %v1534_v24 }
 0x417   : > { %v4089_v41 = vpop.eup %3278  ;;  %v1535_v31 = vmul.f32 %v4085_v18, %v4049_v47  ;;  %3290 = vrcp.f32 %v4078_v19  ;;  %v1603_v59 = vmul.f32 %v3269_v3, %v1571_v9  ;;  %v1568_v38 = vsub.f32 2.0, %v1536_v10 }
 0x418   : > { %v4094_v5 = vpop.eup %3280  ;;  %3292 = vrcp.f32 %v4068_v57  ;;  %v1569_v56 = vsub.f32 2.0, %v1537_v53  ;;  %v1542_v63 = vmul.f32 %v4089_v41, %v4055_v29 }
 0x419   : > { %v3283_v37 = vpop.eup %3282  ;;  %v1544_v3 = vmul.f32 %v4094_v5, %v4059_v6  ;;  %v1567_v8 = vsub.f32 2.0, %v1535_v31  ;;  %3294 = vrcp.f32 %v4092_v62  ;;  %v1600_v29 = vmul.f32 %v4080_v26, %v1568_v38 }
 0x41a   : > { %v4099_v0 = vpop.xlane.xlu0 %1482  ;;  %v3285_v60 = vpop.eup %3284  ;;  %v1545_v52 = vmul.f32 %v3283_v37, %v4061_v35  ;;  %v4134_v35 = vld [vmem:[%s4230_s3 + $0x30] sm:$0xff]   ;;  %3296 = vrcp.f32 %v4126_v50 }
 0x41b   : > { %v1543_v39 = vmul.f32 %v3285_v60, %v4057_v54  ;;  %v1598_v54 = vmul.f32 %v4076_v14, %v1566_v58 }
 0x41c   : > { %v1577_v15 = vsub.f32 2.0, %v1545_v52 }
 0x41d   : > { %v1575_v24 = vsub.f32 2.0, %v1543_v39  ;;  %v3173_v39 = vld [vmem:[%s4230_s3 + $0x38] sm:$0xff]  }
 0x41e   : > { %v1489_v6 = vpop.xlane.xlu0 %1488 }
 0x41f   : > { %3298 = vrcp.f32 %v1489_v6 }
 0x420   : > { %3300 = vrcp.f32 %v4099_v0 }
 0x436   : > { %v2778_v48 = vpop.f32.mrb[32].mxu1 }
 0x437   : > { %v1757_v40 = vpop.f32.mrb[33].mxu1  ;;  %v1952_v32 = vmul.f32 %v2778_v48, %v1596_v20  ;;  %v1576_v48 = vsub.f32 2.0, %v1544_v3 }
 0x438   : > { %v2779_v12 = vpop.f32.mrb[34].mxu1  ;;  %v1950_v44 = vmul.f32 %v1757_v40, %v1594_v55  ;;  %v3287_v40 = vpop.eup %3286  ;;  %v1599_v55 = vmul.f32 %v4085_v18, %v1567_v8 }
 0x439   : > { %v1953_v25 = vmul.f32 %v2779_v12, %v1597_v7  ;;  %v1760_v27 = vpop.f32.mrb[35].mxu1  ;;  %v1574_v7 = vsub.f32 2.0, %v1542_v63  ;;  %v3289_v12 = vpop.eup %3288 }
 0x43a   : > { %v1951_v42 = vmul.f32 %v1760_v27, %v1595_v33  ;;  %v2794_v13 = vpop.f32.mrb[32].mxu0  ;;  %v3291_v10 = vpop.eup %3290 }
 0x43b   : > { %v1979_v17 = vpack.c.bf16 %v1953_v25, %v1952_v32  ;;  %v1834_v34 = vpop.f32.mrb[33].mxu0  ;;  %v4105_v61 = vmul.f32 %v2794_v13, %v1604_v28  ;;  %v3293_v27 = vpop.eup %3292  ;;  %v1609_v28 = vmul.f32 %v3283_v37, %v1577_v15  ;;  %v1606_v13 = vmul.f32 %v4089_v41, %v1574_v7 }
 0x43c   : > { %v1978_v51 = vpack.c.bf16 %v1951_v42, %v1950_v44  ;;  %v2795_v46 = vpop.f32.mrb[34].mxu0  ;;  %v4112_v47 = vmul.f32 %v1834_v34, %v1602_v36  ;;  %v1608_v44 = vmul.f32 %v4094_v5, %v1576_v48  ;;  %v1548_v34 = vmul.f32 %v3289_v12, %v4074_v30  ;;  %v3295_v41 = vpop.eup %3294 }
 0x43d   : > { %v4107_v16 = vmul.f32 %v2795_v46, %v1605_v11  ;;  %v1837_v49 = vpop.f32.mrb[35].mxu0  ;;  %v1549_v11 = vmul.f32 %v3291_v10, %v4078_v19  ;;  %v3297_v30 = vpop.eup %3296 }
 0x43e   : > { %v4114_v21 = vmul.f32 %v1837_v49, %v1603_v59  ;;  %2832 = vmatprep.mubr.msk.bf16.mxu0 %vm374_vm0, %v1978_v51  ;;  %v1546_v59 = vmul.f32 %v3287_v40, %v4065_v2  ;;  %v1547_v49 = vmul.f32 %v3293_v27, %v4068_v57  ;;  %v1580_v19 = vsub.f32 2.0, %v1548_v34  ;;  %v3299_v38 = vpop.eup %3298 }
 0x43f   : > { %v1983_v23 = vpack.c.bf16 %v4107_v16, %v4105_v61  ;;  %2833 = vmatmul.mubr.msk.bf16.vlgmr.msra.gmra.mrb[40].mxu0 %vm374_vm0, %v1979_v17  ;;  %v1607_v17 = vmul.f32 %v3285_v60, %v1575_v24  ;;  %v1581_v58 = vsub.f32 2.0, %v1549_v11  ;;  %v3301_v2 = vpop.eup %3300  ;;  %v1552_v57 = vmul.f32 %v3297_v30, %v4126_v50 }
 0x440   : > { %v1982_v4 = vpack.c.bf16 %v4114_v21, %v4112_v47  ;;  %2841 = vmatpush3.bf16.msra.mxu0 %v4045_v1  ;;  %v1601_v1 = vmul.f32 %v4082_v22, %v1569_v56  ;;  %v1578_v47 = vsub.f32 2.0, %v1546_v59  ;;  %v1579_v21 = vsub.f32 2.0, %v1547_v49 }
 0x441   : > { %2842 = vmatprep.subr.bf16.mxu0 %v3171_v43  ;;  %v1553_v56 = vmul.f32 %v3299_v38, %v1489_v6  ;;  %v1612_v52 = vmul.f32 %v3289_v12, %v1580_v19  ;;  %v1613_v8 = vmul.f32 %v3291_v10, %v1581_v58 }
 0x442   : > { %v2782_v45 = vpop.f32.mrb[36].mxu1  ;;  %v1611_v48 = vmul.f32 %v3293_v27, %v1579_v21 }
 0x443   : > { %v1773_v20 = vpop.f32.mrb[37].mxu1  ;;  %v1956_v26 = vmul.f32 %v2782_v45, %v1600_v29  ;;  %v1551_v29 = vmul.f32 %v3301_v2, %v4099_v0  ;;  %v1610_v45 = vmul.f32 %v3287_v40, %v1578_v47  ;;  %v1585_v7 = vsub.f32 2.0, %v1553_v56 }
 0x444   : > { %v2783_v9 = vpop.f32.mrb[38].mxu1  ;;  %2843 = vmatpush3.bf16.msra.mxu0 %v3171_v43  ;;  %v1954_v32 = vmul.f32 %v1773_v20, %v1598_v54 }
 0x445   : > { %v1957_v14 = vmul.f32 %v2783_v9, %v1601_v1  ;;  %v1776_v33 = vpop.f32.mrb[39].mxu1  ;;  %2852 = vmatprep.subr.bf16.mxu0 %v4134_v35  ;;  %v1583_v24 = vsub.f32 2.0, %v1551_v29  ;;  %v1617_v61 = vmul.f32 %v3299_v38, %v1585_v7 }
 0x446   : > { %v1955_v25 = vmul.f32 %v1776_v33, %v1599_v55  ;;  %v2798_v22 = vpop.f32.mrb[36].mxu0 }
 0x447   : > { %v1981_v36 = vpack.c.bf16 %v1957_v14, %v1956_v26  ;;  %v1850_v42 = vpop.f32.mrb[37].mxu0  ;;  %v1964_v31 = vmul.f32 %v2798_v22, %v1608_v44  ;;  %v1615_v14 = vmul.f32 %v3301_v2, %v1583_v24 }
 0x448   : > { %v1980_v18 = vpack.c.bf16 %v1955_v25, %v1954_v32  ;;  %v2799_v53 = vpop.f32.mrb[38].mxu0  ;;  %v1962_v43 = vmul.f32 %v1850_v42, %v1606_v13 }
 0x449   : > { %v1965_v51 = vmul.f32 %v2799_v53, %v1609_v28  ;;  %v1853_v46 = vpop.f32.mrb[39].mxu0 }
 0x44a   : > { %v1963_v5 = vmul.f32 %v1853_v46, %v1607_v17  ;;  %2836 = vmatprep.mubr.msk.bf16.mxu0 %vm374_vm0, %v1980_v18 }
 0x44b   : > { %v1985_v37 = vpack.c.bf16 %v1965_v51, %v1964_v31  ;;  %2837 = vmatmul.mubr.msk.bf16.gmra.mrb[44].mxu0 %vm374_vm0, %v1981_v36  ;;  %v2575_v36 = vld [vmem:[%s4231_s4] ss:$0 sm:$0xff] }
 0x44c   : > { %v1984_v60 = vpack.c.bf16 %v1963_v5, %v1962_v43  ;;  %2844 = vmatprep.mubr.msk.bf16.mxu0 %vm374_vm0, %v1982_v4  ;;  %v1550_v4 = vmul.f32 %v3295_v41, %v4092_v62  ;;  %v1584_v62 = vsub.f32 2.0, %v1552_v57 }
 0x44e   : > { %v1582_v40 = vsub.f32 2.0, %v1550_v4  ;;  %v1616_v12 = vmul.f32 %v3297_v30, %v1584_v62 }
 0x450   : > { %v2810_v3 = vpop.f32.mrb[40].mxu1  ;;  %v1614_v16 = vmul.f32 %v3295_v41, %v1582_v40 }
 0x451   : > { %v1911_v63 = vpop.f32.mrb[41].mxu1  ;;  %v1968_v15 = vmul.f32 %v2810_v3, %v1612_v52 }
 0x452   : > { %v2811_v54 = vpop.f32.mrb[42].mxu1  ;;  %v1966_v50 = vmul.f32 %v1911_v63, %v1610_v45 }
 0x453   : > { %v1969_v20 = vmul.f32 %v2811_v54, %v1613_v8  ;;  %v1914_v1 = vpop.f32.mrb[43].mxu1  ;;  %2845 = vmatmul.mubr.msk.bf16.vlgmr.msra.gmra.mrb[40].mxu0 %vm374_vm0, %v1983_v23 }
 0x454   : > { %v1967_v6 = vmul.f32 %v1914_v1, %v1611_v48  ;;  %2848 = vmatprep.mubr.msk.bf16.mxu0 %vm374_vm0, %v1984_v60  ;;  %2853 = vmatpush3.bf16.msra.mxu0 %v4134_v35 }
 0x455   : > { %v1987_v0 = vpack.c.bf16 %v1969_v20, %v1968_v15  ;;  %2854 = vmatprep.subr.bf16.mxu0 %v3173_v39 }
 0x456   : > { %v1986_v9 = vpack.c.bf16 %v1967_v6, %v1966_v50 }
 0x458   : > { %v2814_v55 = vpop.f32.mrb[44].mxu1  ;;  %2855 = vmatpush3.bf16.msra.mxu0 %v3173_v39 }
 0x459   : > { %v1927_v26 = vpop.f32.mrb[45].mxu1  ;;  %v1972_v33 = vmul.f32 %v2814_v55, %v1616_v12 }
 0x45a   : > { %v2815_v23 = vpop.f32.mrb[46].mxu1  ;;  %v1970_v32 = vmul.f32 %v1927_v26, %v1614_v16 }
 0x45b   : > { %v1973_v10 = vmul.f32 %v2815_v23, %v1617_v61  ;;  %v1930_v35 = vpop.f32.mrb[47].mxu1  ;;  %2849 = vmatmul.mubr.msk.bf16.gmra.mrb[44].mxu0 %vm374_vm0, %v1985_v37 }
 0x45c   : > { %v1971_v25 = vmul.f32 %v1930_v35, %v1615_v14  ;;  %2856 = vmatprep.mubr.msk.bf16.mxu0 %vm374_vm0, %v1986_v9 }
 0x45d   : > { %v1989_v22 = vpack.c.bf16 %v1973_v10, %v1972_v33 }
 0x45e   : > { %v1988_v27 = vpack.c.bf16 %v1971_v25, %v1970_v32 }
 0x463   : > { %2857 = vmatmul.mubr.msk.bf16.vlgmr.msra.gmra.mrb[40].mxu0 %vm374_vm0, %v1987_v0 }
 0x464   : > { %2860 = vmatprep.mubr.msk.bf16.mxu0 %vm374_vm0, %v1988_v27 }
 0x46b   : > { %2861 = vmatmul.mubr.msk.bf16.gmra.mrb[44].mxu0 %vm374_vm0, %v1989_v22 }
 0x536   : > { %v2858_v44 = vpop.f32.mrb[40].mxu0 }
 0x537   : > { %v2378_v42 = vadd.f32 %v2858_v44, %v2575_v36  ;;  %v2315_v28 = vpop.f32.mrb[41].mxu0 }
 0x538   : > { %v2376_v18 = vadd.f32 %v2575_v36, %v2315_v28  ;;  %v2859_v13 = vpop.f32.mrb[42].mxu0 }
 0x539   : > { %2386 = vst [vmem:[%s248_s23 + $0x10] sm:$0xff] %v2378_v42  ;;  %v2379_v53 = vadd.f32 %v2859_v13, %v2575_v36  ;;  %v2318_v17 = vpop.f32.mrb[43].mxu0 }
 0x53a   : > { %2384 = vst [vmem:[%s248_s23] sm:$0xff] %v2376_v18  ;;  %v2377_v34 = vadd.f32 %v2575_v36, %v2318_v17 }
 0x53b   : > { %2387 = vst [vmem:[%s248_s23 + $0x18] sm:$0xff] %v2379_v53 }
 0x53c   : > { %2385 = vst [vmem:[%s248_s23 + $0x8] sm:$0xff] %v2377_v34 }
 0x53e   : > { %v2862_v11 = vpop.f32.mrb[44].mxu0 }
 0x53f   : > { %v2382_v31 = vadd.f32 %v2862_v11, %v2575_v36  ;;  %v2331_v51 = vpop.f32.mrb[45].mxu0 }
 0x540   : > { %v2380_v46 = vadd.f32 %v2575_v36, %v2331_v51  ;;  %v2863_v59 = vpop.f32.mrb[46].mxu0 }
 0x541   : > { %2390 = vst [vmem:[%s248_s23 + $0x30] sm:$0xff] %v2382_v31  ;;  %v2383_v49 = vadd.f32 %v2863_v59, %v2575_v36  ;;  %v2334_v43 = vpop.f32.mrb[47].mxu0 }
 0x542   : > { %2388 = vst [vmem:[%s248_s23 + $0x20] sm:$0xff] %v2380_v46  ;;  %v2381_v5 = vadd.f32 %v2575_v36, %v2334_v43 }
 0x543   : > { %2391 = vst [vmem:[%s248_s23 + $0x38] sm:$0xff] %v2383_v49 }
 0x544   : > { %2389 = vst [vmem:[%s248_s23 + $0x28] sm:$0xff] %v2381_v5 }
 0x545   : > { %3371 = shalt.err (!%p3368_p11)
}
 0x546   : > { %s3372_s13 = scalar_lea.hbm %s4182_s30, 1024  ;;  %s3376_s16 = scalar_lea.hbm %s4232_s5, 2048 }
 0x547   : > { %p3373_p13 = scmp.ne.s32.totalorder %s4182_s30, %s3372_s13  ;;  %p3377_p6 = scmp.lt.u32.totalorder %s4182_s30, %s4232_s5 }
 0x548   : > { %p3378_p9 = scmp.lt.u32.totalorder %s3376_s16, %s3372_s13  ;;  %p3380_p10 = scmp.lt.u32.totalorder %s3372_s13, %s4182_s30 }
 0x549   : > { %p3374_p0 = pnand %p3373_p13, %p4245_p1 }
 0x54a   : > { %p3379_p12 = por %p3378_p9, %p3377_p6 }
 0x54b   : > { %p3375_p5 = pneg %p3374_p0 }
 0x54c   : > { %p3381_p2 = por %p3380_p10, %p3379_p12 }
 0x54e   : > { %p3382_p3 = pnand %p3381_p2, %p3375_p5 }
 0x550   : > { %3385 = shalt.err (!%p3382_p3)
}
 0x551   : > { %s3441_s23 = smov 128   ;;  %s3442_s26 = smov 8  }
 0x552   : > { %2912 = dma.vmem_to_hbm [thread:$0]  (%p4245_p1), %s4177_s25, 1024, %s4182_s30, %s4186_s22, %s3441_s23, %s3441_s23, %s3442_s26  }
 0x553 PF: > { %p2929_p4 = scmp.ge.s32.totalorder %s3428_s21, 2  ;;  %s2421_s6 = sand.u32 1, %s3416_s18  }
 0x554   : > { %p4246_p7 = scmp.ne.s32.totalorder %s4237_s29, 0  ;;  %s2422_s8 = scalar_lea.sflag [#allocation4], %s2421_s6 }
 0x556   : > { %p2922_p8 = pnand %p2929_p4, %p4246_p7 }
 0x558   : > { %3411 = dma.done.wait (!%p2922_p8), %s2422_s8, 1024  }
 0x559   : > { %3413 = vsyncadd (!%p2922_p8), %s2422_s8, 4294966272  ;;  %p17_p11 = scmp.ge.s32.totalorder %s3498_s24, 4   ;;  %s4247_s18 = smov %s3420_s19 }
 0x55a   : > { %s4248_s19 = smov %s3424_s20  ;;  %s4249_s20 = smov %s3509_s27 }
 0x55b   : > { %s4250_s21 = smov %s3498_s24  ;;  %19 = sbr.rel (!%p17_p11) target bundleno = 5 (0x5), region = 84 }
 0x562   :  { %2427 = vsyncpa [#allocation3], 1 }
 0x563   :  { %2429 = vsyncpa [#allocation3 + $0x1], 1 }
 0x564   :  { %2430 = vsyncpa [#allocation6], 1 }
 0x565   :  { %2431 = vsyncpa [#allocation4], 1 }
 0x566   :  { %2433 = vsyncpa [#allocation4 + $0x1], 1 }

</bundles_post_ra>
